<compile_context>
chip_gen: v7x
topology: tpu7x:2x2x1
jax: 0.10.0
libtpu: 0.0.40
codegen_flags: <defaults>
</compile_context>

<pallas_src>
import functools

import jax
import jax.numpy as jnp
from jax import lax
from jax.experimental import pallas as pl
from jax.experimental.pallas import tpu as pltpu


_LANE = 128      # last-dim padding target (lane width)
_SUBLANE = 8     # f32 sublane packing


def _round_up(x, m):
    return ((x + m - 1) // m) * m


def _lgs_kernel(ht_ref, p0_ref, prior_term_ref, bias_ref, obs_ref,
                m_ref, rhs_ref, *, scale: float):
    """Fused stats kernel (grid axis 0 = batch blocks).

    ht_ref         : VMEM (Sp, Op) whitened H^T (isotropic: H^T itself)
    p0_ref         : VMEM (Sp, Sp) prior precision (zero-padded)
    prior_term_ref : VMEM (1, Sp)  (prior_precision @ prior_mean) row
    bias_ref       : VMEM (1, Op)  observation bias row
    obs_ref        : VMEM (TB, Op) observation block
    m_ref          : VMEM (Sp, Sp) prior_precision + H^T R^-1 H   (written once)
    rhs_ref        : VMEM (TB, Sp) (P0 mu0)^T + (obs - bias) R^-1 H
    """
    contract_o = (((1,), (1,)), ((), ()))        # NT contraction over the padded O axis
    ht = ht_ref[...]                              # (Sp, Op)

    # Parameter-only term: computed once on the first batch block.  Its output
    # BlockSpec maps every grid step to the same tile, so it stays VMEM-resident
    # and is written back a single time (no per-batch recompute / re-DMA of P0).
    @pl.when(pl.program_id(0) == 0)
    def _():
        gram = lax.dot_general(ht, ht, contract_o,
                               preferred_element_type=jnp.float32)   # (Sp, Sp)
        if scale != 1.0:          # trace-time Python constant; folds away at 1.0
            gram = gram * scale
        m_ref[...] = p0_ref[...] + gram

    centered = obs_ref[...] - bias_ref[...]                          # (TB, Op)
    proj = lax.dot_general(centered, ht, contract_o,
                           preferred_element_type=jnp.float32)       # (TB, Sp)
    if scale != 1.0:
        proj = proj * scale
    rhs_ref[...] = prior_term_ref[...] + proj


def _lgs_stats_pallas(ht_eff, p0, prior_term, bias_eff, obs_eff, scale):
    f32 = jnp.float32
    S, O = ht_eff.shape
    B = obs_eff.shape[0]

    # Lane-dense layout plumbing (wrapper only): pad last dims to 128 multiples
    # so all kernel loads/stores are unmasked full vregs and the MXU sees a
    # K >= 128 contraction.  Padded zeros on the O axis are a no-op; padded S
    # rows/cols are sliced off after the call.
    Sp = _round_up(S, _LANE)
    Op = _round_up(O, _LANE)
    Bp = _round_up(B, _SUBLANE)
    TB = min(Bp, 256)                 # batch block (sublane dim)
    Bp = _round_up(Bp, TB)
    nb = Bp // TB

    ht_p = jnp.zeros((Sp, Op), f32).at[:S, :O].set(ht_eff)
    p0_p = jnp.zeros((Sp, Sp), f32).at[:S, :S].set(p0)
    pt_p = jnp.zeros((1, Sp), f32).at[:, :S].set(prior_term)
    bias_p = jnp.zeros((1, Op), f32).at[:, :O].set(bias_eff)
    obs_p = jnp.zeros((Bp, Op), f32).at[:B, :O].set(obs_eff)

    cost = pl.CostEstimate(
        flops=2 * Sp * Op * Sp + 2 * Bp * Op * Sp,
        transcendentals=0,
        bytes_accessed=4 * (Sp * Op + Sp * Sp + Sp + Op + Bp * Op
                            + Sp * Sp + Bp * Sp),
    )

    m_p, rhs_p = pl.pallas_call(
        functools.partial(_lgs_kernel, scale=float(scale)),
        out_shape=(jax.ShapeDtypeStruct((Sp, Sp), f32),
                   jax.ShapeDtypeStruct((Bp, Sp), f32)),
        grid_spec=pltpu.PrefetchScalarGridSpec(
            num_scalar_prefetch=0,
            grid=(nb,),
            in_specs=[
                pl.BlockSpec((Sp, Op), lambda i: (0, 0)),   # whitened H^T (DMA'd once)
                pl.BlockSpec((Sp, Sp), lambda i: (0, 0)),   # prior precision (DMA'd once)
                pl.BlockSpec((1, Sp), lambda i: (0, 0)),    # P0 @ mu0 row
                pl.BlockSpec((1, Op), lambda i: (0, 0)),    # bias row
                pl.BlockSpec((TB, Op), lambda i: (i, 0)),   # observation block
            ],
            out_specs=(
                pl.BlockSpec((Sp, Sp), lambda i: (0, 0)),   # M: resident, written once
                pl.BlockSpec((TB, Sp), lambda i: (i, 0)),   # rhs: per batch block
            ),
        ),
        # The batch axis revisits the M output tile (written only on step 0),
        # so it is "arbitrary", not "parallel".
        compiler_params=pltpu.CompilerParams(dimension_semantics=("arbitrary",)),
        cost_estimate=cost,
    )(ht_p, p0_p, pt_p, bias_p, obs_p)

    return m_p[:S, :S], rhs_p[:B, :S]


def linear_gaussian_system(observation, observation_matrix, observation_bias,
                           prior_mean, prior_precision, observation_noise=None,
                           prior_covariance=None, use_pallas=None):
    """observation: (B, O).  Returns (posterior_mean (B, S, 1), posterior_cov (S, S))."""
    B, O = observation.shape
    O2, S = observation_matrix.shape
    assert O == O2
    f32 = jnp.float32

    H = observation_matrix.astype(f32)
    bias = observation_bias.astype(f32).reshape(1, O)
    obs = observation.astype(f32)

    if prior_covariance is not None:
        # SPD inverse via Cholesky (no general inverse), symmetrized.
        chol_pc = jnp.linalg.cholesky(prior_covariance.astype(f32))
        p0 = jax.scipy.linalg.cho_solve((chol_pc, True), jnp.eye(S, dtype=f32))
        p0 = 0.5 * (p0 + p0.T)
    else:
        p0 = prior_precision.astype(f32)
    prior_term = (p0 @ prior_mean.astype(f32)).reshape(1, S)    # parameter-only, hoisted

    if observation_noise is None:
        # R = 1e-6 I  =>  R^-1 = 1e6 I: a trace-time scalar.  No dense Rinv, no
        # inverse, and H^T is passed to the kernel exactly once.
        scale = 1e6
        ht_eff, obs_eff, bias_eff = H.T, obs, bias
    else:
        # Whiten through the Cholesky factor of the SPD noise covariance:
        #   Rinv = L^-T L^-1, so  H^T Rinv H = (L^-1 H)^T (L^-1 H)   (exactly
        #   symmetric Gram) and H^T Rinv (y-b) = (L^-1 H)^T (L^-1 (y-b)).
        scale = 1.0
        Lr = jnp.linalg.cholesky(observation_noise.astype(f32))
        ht_eff = jax.scipy.linalg.solve_triangular(Lr, H, lower=True).T          # (S, O)
        obs_eff = jax.scipy.linalg.solve_triangular(Lr, obs.T, lower=True).T     # (B, O)
        bias_eff = jax.scipy.linalg.solve_triangular(Lr, bias.T, lower=True).T   # (1, O)

    if use_pallas is None:
        # Below this, launch overhead + the extra HBM round trip dwarf the FLOPs;
        # let XLA fuse the tiny matmuls instead.
        use_pallas = S * O * (S + B) >= (1 << 16)

    if use_pallas:
        m, rhs = _lgs_stats_pallas(ht_eff, p0, prior_term, bias_eff, obs_eff, scale)
    else:
        m = p0 + scale * (ht_eff @ ht_eff.T)
        rhs = prior_term + scale * ((obs_eff - bias_eff) @ ht_eff.T)

    # TODO(synk): dense SPD factorization has no clean Pallas TPU primitive; the
    # Cholesky solve (faster + safer than a general inverse) and the tiny
    # (S,S)x(S,B) mean product stay in XLA so they fuse around the solve.
    m = 0.5 * (m + m.T)
    chol = jnp.linalg.cholesky(m)
    posterior_covariance = jax.scipy.linalg.cho_solve((chol, True), jnp.eye(S, dtype=f32))
    posterior_mean = jnp.einsum('st,bt->bs', posterior_covariance, rhs).reshape(B, S, 1)
    return posterior_mean, posterior_covariance


def _reference(observation, H, bias, prior_mean, prior_precision):
    O = H.shape[0]
    Rinv = (1.0 / 1e-6) * jnp.eye(O, dtype=jnp.float32)
    innovation = H.T @ Rinv @ H
    post_cov = jnp.linalg.inv(prior_precision + innovation)
    centered = (observation - bias[None, :])[..., None]          # (B, O, 1)
    residual = jnp.einsum('so,boi->bsi', H.T @ Rinv, centered)   # (B, S, 1)
    prior_term = (prior_precision @ prior_mean)[None, :, None]   # (1, S, 1)
    post_mean = jnp.einsum('st,bti->bsi', post_cov, prior_term + residual)
    return post_mean, post_cov


if __name__ == "__main__":
    B, S, O = 8, 32, 16

    key = jax.random.PRNGKey(0)
    k_h, k_b, k_obs = jax.random.split(key, 3)

    # Deterministic parameter init (mirrors nn.Module.__init__ shapes/scales).
    observation_matrix = 0.001 * jax.random.normal(k_h, (O, S), dtype=jnp.float32)
    observation_bias = 1e-6 * jax.random.normal(k_b, (O,), dtype=jnp.float32)
    prior_mean = jnp.zeros((S,), dtype=jnp.float32)
    prior_precision = jnp.eye(S, dtype=jnp.float32)

    observation = jax.random.normal(k_obs, (B, O), dtype=jnp.float32)

    # Force the Pallas path (the auto-dispatch would fall back to plain jnp at
    # these launch-overhead-dominated test shapes).
    fwd = jax.jit(lambda obs: linear_gaussian_system(
        obs, observation_matrix, observation_bias, prior_mean, prior_precision,
        use_pallas=True))
    post_mean, post_cov = fwd(observation)
    jax.block_until_ready((post_mean, post_cov))

    ref_mean, ref_cov = _reference(observation, observation_matrix,
                                   observation_bias, prior_mean, prior_precision)
    assert post_mean.shape == (B, S, 1)
    assert post_cov.shape == (S, S)
    # Cholesky-solve vs. general inverse agree only up to f32 roundoff amplified
    # by cond(M); use magnitude-aware tolerances.
    mean_scale = float(jnp.max(jnp.abs(ref_mean)))
    cov_scale = float(jnp.max(jnp.abs(ref_cov)))
    assert jnp.allclose(post_mean, ref_mean, atol=5e-4 * mean_scale, rtol=5e-4)
    assert jnp.allclose(post_cov, ref_cov, atol=5e-4 * cov_scale, rtol=5e-4)

    print("KERNEL_OK")
</pallas_src>

<mosaic_0001>
module attributes {stable_mosaic.version = 11 : i64} {
  func.func @_lgs_kernel(%arg0: i32, %arg1: memref<128x128xf32, #tpu.memory_space<vmem>>, %arg2: memref<128x128xf32, #tpu.memory_space<vmem>>, %arg3: memref<1x128xf32, #tpu.memory_space<vmem>>, %arg4: memref<1x128xf32, #tpu.memory_space<vmem>>, %arg5: memref<8x128xf32, #tpu.memory_space<vmem>>, %arg6: memref<128x128xf32, #tpu.memory_space<vmem>>, %arg7: memref<8x128xf32, #tpu.memory_space<vmem>>) attributes {dimension_semantics = [#tpu.dimension_semantics<arbitrary>], iteration_bounds = array<i64: 1>, scalar_prefetch = 0 : i64, scratch_operands = 0 : i64, tpu.core_type = #tpu.core_type<tc>, window_params = [{pipeline_mode = #tpu.pipeline_mode<synchronous>, transform_indices = @transform_0, window_bounds = array<i64: 128, 128>}, {pipeline_mode = #tpu.pipeline_mode<synchronous>, transform_indices = @transform_1, window_bounds = array<i64: 128, 128>}, {pipeline_mode = #tpu.pipeline_mode<synchronous>, transform_indices = @transform_2, window_bounds = array<i64: 1, 128>}, {pipeline_mode = #tpu.pipeline_mode<synchronous>, transform_indices = @transform_3, window_bounds = array<i64: 1, 128>}, {transform_indices = @transform_4, window_bounds = array<i64: 8, 128>}, {pipeline_mode = #tpu.pipeline_mode<synchronous>, transform_indices = @transform_5, window_bounds = array<i64: 128, 128>}, {transform_indices = @transform_6, window_bounds = array<i64: 8, 128>}]} {
    %c0 = arith.constant 0 : index
    %c0_0 = arith.constant 0 : index
    %0 = vector.load %arg1[%c0, %c0_0] : memref<128x128xf32, #tpu.memory_space<vmem>>, vector<128x128xf32>
    %c0_i32 = arith.constant 0 : i32
    %1 = arith.cmpi eq, %arg0, %c0_i32 : i32
    %2 = arith.extui %1 : i1 to i32
    %c0_i32_1 = arith.constant 0 : i32
    %3 = arith.cmpi ne, %2, %c0_i32_1 : i32
    scf.if %3 {
      %cst_11 = arith.constant dense<0.000000e+00> : vector<128x128xf32>
      %15 = tpu.matmul %0, %0, %cst_11 {dimension_numbers = #tpu.dot_dimension_numbers<[1], [1], [0], [0], [0, 0, 1, 0], [], []>} : vector<128x128xf32>, vector<128x128xf32>, vector<128x128xf32> -> vector<128x128xf32>
      %cst_12 = arith.constant 1.000000e+06 : f32
      %16 = vector.broadcast %cst_12 : f32 to vector<128x128xf32>
      %17 = arith.mulf %15, %16 : vector<128x128xf32>
      %c0_13 = arith.constant 0 : index
      %c0_14 = arith.constant 0 : index
      %18 = vector.load %arg2[%c0_13, %c0_14] : memref<128x128xf32, #tpu.memory_space<vmem>>, vector<128x128xf32>
      %19 = arith.addf %18, %17 : vector<128x128xf32>
      %c0_15 = arith.constant 0 : index
      %c0_16 = arith.constant 0 : index
      %20 = vector.load %arg6[%c0_15, %c0_16] : memref<128x128xf32, #tpu.memory_space<vmem>>, vector<128x128xf32>
      tpu.vector_store %arg6[%c0_15, %c0_16], %19 {strides = array<i32>} : memref<128x128xf32, #tpu.memory_space<vmem>>, vector<128x128xf32>,
    } else {
    }
    %c0_2 = arith.constant 0 : index
    %c0_3 = arith.constant 0 : index
    %4 = vector.load %arg5[%c0_2, %c0_3] : memref<8x128xf32, #tpu.memory_space<vmem>>, vector<8x128xf32>
    %c0_4 = arith.constant 0 : index
    %c0_5 = arith.constant 0 : index
    %5 = vector.load %arg4[%c0_4, %c0_5] : memref<1x128xf32, #tpu.memory_space<vmem>>, vector<1x128xf32>
    %6 = vector.broadcast %5 : vector<1x128xf32> to vector<8x128xf32>
    %7 = arith.subf %4, %6 : vector<8x128xf32>
    %cst = arith.constant dense<0.000000e+00> : vector<8x128xf32>
    %8 = tpu.matmul %7, %0, %cst {dimension_numbers = #tpu.dot_dimension_numbers<[1], [1], [0], [0], [0, 0, 1, 0], [], []>} : vector<8x128xf32>, vector<128x128xf32>, vector<8x128xf32> -> vector<8x128xf32>
    %cst_6 = arith.constant 1.000000e+06 : f32
    %9 = vector.broadcast %cst_6 : f32 to vector<8x128xf32>
    %10 = arith.mulf %8, %9 : vector<8x128xf32>
    %c0_7 = arith.constant 0 : index
    %c0_8 = arith.constant 0 : index
    %11 = vector.load %arg3[%c0_7, %c0_8] : memref<1x128xf32, #tpu.memory_space<vmem>>, vector<1x128xf32>
    %12 = vector.broadcast %11 : vector<1x128xf32> to vector<8x128xf32>
    %13 = arith.addf %12, %10 : vector<8x128xf32>
    %c0_9 = arith.constant 0 : index
    %c0_10 = arith.constant 0 : index
    %14 = vector.load %arg7[%c0_9, %c0_10] : memref<8x128xf32, #tpu.memory_space<vmem>>, vector<8x128xf32>
    tpu.vector_store %arg7[%c0_9, %c0_10], %13 {strides = array<i32>} : memref<8x128xf32, #tpu.memory_space<vmem>>, vector<8x128xf32>,
    return
  }
  func.func @transform_0(%arg0: i32) -> (i32, i32) {
    %c0_i32 = arith.constant 0 : i32
    %c0_i32_0 = arith.constant 0 : i32
    %c0_i32_1 = arith.constant 0 : i32
    return %c0_i32, %c0_i32_0 : i32, i32
  }
  func.func @transform_1(%arg0: i32) -> (i32, i32) {
    %c0_i32 = arith.constant 0 : i32
    %c0_i32_0 = arith.constant 0 : i32
    %c0_i32_1 = arith.constant 0 : i32
    return %c0_i32, %c0_i32_0 : i32, i32
  }
  func.func @transform_2(%arg0: i32) -> (i32, i32) {
    %c0_i32 = arith.constant 0 : i32
    %c0_i32_0 = arith.constant 0 : i32
    %c0_i32_1 = arith.constant 0 : i32
    return %c0_i32, %c0_i32_0 : i32, i32
  }
  func.func @transform_3(%arg0: i32) -> (i32, i32) {
    %c0_i32 = arith.constant 0 : i32
    %c0_i32_0 = arith.constant 0 : i32
    %c0_i32_1 = arith.constant 0 : i32
    return %c0_i32, %c0_i32_0 : i32, i32
  }
  func.func @transform_4(%arg0: i32) -> (i32, i32) {
    %c0_i32 = arith.constant 0 : i32
    %c0_i32_0 = arith.constant 0 : i32
    return %arg0, %c0_i32 : i32, i32
  }
  func.func @transform_5(%arg0: i32) -> (i32, i32) {
    %c0_i32 = arith.constant 0 : i32
    %c0_i32_0 = arith.constant 0 : i32
    %c0_i32_1 = arith.constant 0 : i32
    return %c0_i32, %c0_i32_0 : i32, i32
  }
  func.func @transform_6(%arg0: i32) -> (i32, i32) {
    %c0_i32 = arith.constant 0 : i32
    %c0_i32_0 = arith.constant 0 : i32
    return %arg0, %c0_i32 : i32, i32
  }
}

</mosaic_0001>

<bundles_post_ra>
// kernel: custom-call.6
= control target key start
LH: loop header
LB: loop body
LE: loop exit
PB: predicated region body
PF: predicated region fallthrough
CT: control target
= control target key end

     0   :  { %v1561_v0 = vmov 0.0   ;;  %vm53_vm0 = vcmask 7168   ;;  %vm110_vm1 = vcmask 15368   ;;  %vm127_vm2 = vcmask 1047553   ;;  %s1900_s0 = inlined_call_operand.vmem [shape: f32[32,32], index: 0, kind: input, shape index: {}]   ;;  %s1901_s1 = inlined_call_operand.vmem [shape: f32[32,32], index: 1, kind: output, shape index: {}]  }
   0x1   :  { %46 = vst [vmem:[#allocation1] sm:$0xff] %v1561_v0  ;;  %v1575_v4 = vld [vmem:[%s1900_s0] sm:$0xff]  ;;  %v1581_v5 = vld [vmem:[%s1900_s0 + $0x8] sm:$0xff]  ;;  %v1601_v22 = vld [vmem:[%s1900_s0 + $0x10] sm:$0xff]  ;;  %vm171_vm4 = vcmask 23568   ;;  %vm188_vm5 = vcmask 1047554  }
   0x2   :  { %36 = vst [vmem:[#allocation0] sm:$0xff] %v1575_v4  ;;  %38 = vst [vmem:[#allocation0 + $0x8] sm:$0xff] %v1581_v5  ;;  %v1626_v46 = vld [vmem:[%s1900_s0 + $0x18] sm:$0xff]  ;;  %vm232_vm7 = vcmask 31768   ;;  %vm249_vm8 = vcmask 1047555   ;;  %vm293_vm10 = vcmask 39968  }
   0x3   :  { %40 = vst [vmem:[#allocation0 + $0x10] sm:$0xff] %v1601_v22  ;;  %vm128_vm3 = vmand %vm110_vm1, %vm127_vm2  ;;  %vm310_vm11 = vcmask 1047556   ;;  %vm354_vm13 = vcmask 48168   ;;  %vm371_vm14 = vcmask 1047557  }
   0x4   :  { %42 = vst [vmem:[#allocation0 + $0x18] sm:$0xff] %v1626_v46  ;;  %vm189_vm6 = vmand %vm171_vm4, %vm188_vm5 }
   0x5   :  { %vm250_vm9 = vmand %vm232_vm7, %vm249_vm8 }
   0x6   :  { %vm311_vm12 = vmand %vm293_vm10, %vm310_vm11 }
   0x7   :  { %vm372_vm15 = vmand %vm354_vm13, %vm371_vm14 }
   0x8   :  { %v54_v1 = vld [vmem:[#allocation1] ss:$0 sm:$0xff] }
   0x9   :  { %v56_v2 = vmul.f32 %v54_v1, %v54_v1  ;;  %v75_v3 = vmul.f32 0.0, %v54_v1  ;;  %v55_v6 = vld [vmem:[#allocation0] ss:$0 sm:$0xff]  ;;  %v114_v23 = vld [vmem:[#allocation0 + $0x1] ss:$0 sm:$0xff] }
   0xa   :  { %v175_v47 = vld [vmem:[#allocation0 + $0x2] ss:$0 sm:$0xff] }
   0xb   :  { %57 = vadd.xlane.f32.xlu0 %v56_v2  ;;  %76 = vadd.xlane.f32.xlu1 %v75_v3 }
   0xf   :  { %64 = vadd.xlane.f32.xlu0 %v75_v3 }
  0x98   :  { %v58_v7 = vpop.xlane.xlu0 %57  ;;  %v77_v13 = vpop.xlane.xlu1 %76 }
  0x99   :  { %v59_v8 = vsub.f32 %v55_v6, %v58_v7  ;;  %v78_v15 = vsub.f32 %v1581_v5, %v77_v13 }
  0x9b   :  { %1496 = vrsqrt.f32 %v59_v8 }
  0x9c   :  { %v65_v9 = vpop.xlane.xlu0 %64 }
  0x9d   :  { %v66_v10 = vsub.f32 %v1575_v4, %v65_v9 }
  0xa5   :  { %v1585_v11 = vpop.eup %1496 }
  0xa6   :  { %v67_v12 = vmul.f32 %v1585_v11, %v66_v10  ;;  %v79_v16 = vmul.f32 %v1585_v11, %v78_v15 }
  0xa8   :  { %v68_v14 = vsel %vm53_vm0, %v67_v12, 0.0  ;;  %v80_v17 = vsel %vm53_vm0, %v79_v16, 0.0 }
  0xa9   :  { %70 = vst [vmem:[#allocation1] sm:$0xff] %v68_v14 }
  0xb0   :  { %v1592_v18 = vld [vmem:[#allocation1 + $0x1] ss:$0 sm:$0xff] }
  0xb1   :  { %v122_v19 = vmul.f32 %v1592_v18, %v68_v14  ;;  %v115_v20 = vmul.f32 %v1592_v18, %v1592_v18  ;;  %v136_v21 = vmul.f32 %v1592_v18, %v80_v17 }
  0xb3   :  { %123 = vadd.xlane.f32.xlu0 %v122_v19  ;;  %116 = vadd.xlane.f32.xlu1 %v115_v20 }
  0xb7   :  { %137 = vadd.xlane.f32.xlu0 %v136_v21  ;;  %89 = vadd.xlane.f32.xlu1 %v75_v3 }
 0x140   :  { %v117_v24 = vpop.xlane.xlu1 %116  ;;  %v124_v26 = vpop.xlane.xlu0 %123 }
 0x141   :  { %v118_v25 = vsub.f32 %v114_v23, %v117_v24  ;;  %v125_v27 = vsub.f32 %v1575_v4, %v124_v26 }
 0x143   :  { %1498 = vrsqrt.f32 %v118_v25 }
 0x144   :  { %v90_v29 = vpop.xlane.xlu1 %89  ;;  %v138_v35 = vpop.xlane.xlu0 %137 }
 0x145   :  { %v91_v32 = vsub.f32 %v1601_v22, %v90_v29  ;;  %v139_v36 = vsub.f32 %v1581_v5, %v138_v35 }
 0x147   :  { %v92_v34 = vmul.f32 %v1585_v11, %v91_v32 }
 0x149   :  { %v93_v37 = vsel %vm53_vm0, %v92_v34, 0.0 }
 0x14a   :  { %v149_v43 = vmul.f32 %v1592_v18, %v93_v37 }
 0x14d   :  { %v1605_v28 = vpop.eup %1498 }
 0x14e   :  { %v126_v30 = vmul.f32 %v1605_v28, %v125_v27  ;;  %v140_v38 = vmul.f32 %v1605_v28, %v139_v36 }
 0x150   :  { %v129_v31 = vsel %vm128_vm3, %v126_v30, 0.0  ;;  %v141_v42 = vsel %vm110_vm1, %v140_v38, 0.0 }
 0x151   :  { %v130_v33 = vadd.f32 %v129_v31, %v68_v14  ;;  %v142_v44 = vadd.f32 %v141_v42, %v80_v17  ;;  %v236_v14 = vld [vmem:[#allocation0 + $0x3] ss:$0 sm:$0xff] }
 0x153   :  { %131 = vst [vmem:[#allocation1] sm:$0xff] %v130_v33 }
 0x15a   :  { %v1615_v39 = vld [vmem:[#allocation1 + $0x2] ss:$0 sm:$0xff] }
 0x15b   :  { %v183_v40 = vmul.f32 %v1615_v39, %v130_v33  ;;  %v176_v41 = vmul.f32 %v1615_v39, %v1615_v39  ;;  %v197_v45 = vmul.f32 %v1615_v39, %v142_v44 }
 0x15d   :  { %184 = vadd.xlane.f32.xlu0 %v183_v40  ;;  %177 = vadd.xlane.f32.xlu1 %v176_v41 }
 0x161   :  { %102 = vadd.xlane.f32.xlu1 %v75_v3  ;;  %150 = vadd.xlane.f32.xlu0 %v149_v43 }
 0x165   :  { %198 = vadd.xlane.f32.xlu1 %v197_v45 }
 0x1ea   :  { %v178_v48 = vpop.xlane.xlu1 %177  ;;  %v185_v50 = vpop.xlane.xlu0 %184 }
 0x1eb   :  { %v179_v49 = vsub.f32 %v175_v47, %v178_v48  ;;  %v186_v51 = vsub.f32 %v1575_v4, %v185_v50  ;;  %v297_v47 = vld [vmem:[#allocation0 + $0x4] ss:$0 sm:$0xff] }
 0x1ed   :  { %1500 = vrsqrt.f32 %v179_v49 }
 0x1ee   :  { %v151_v53 = vpop.xlane.xlu0 %150  ;;  %v103_v54 = vpop.xlane.xlu1 %102 }
 0x1ef   :  { %v152_v56 = vsub.f32 %v1601_v22, %v151_v53  ;;  %v104_v57 = vsub.f32 %v1626_v46, %v103_v54 }
 0x1f1   :  { %v153_v60 = vmul.f32 %v1605_v28, %v152_v56  ;;  %v105_v61 = vmul.f32 %v1585_v11, %v104_v57 }
 0x1f2   :  { %v199_v62 = vpop.xlane.xlu1 %198 }
 0x1f3   :  { %v154_v63 = vsel %vm110_vm1, %v153_v60, 0.0  ;;  %v106_v0 = vsel %vm53_vm0, %v105_v61, 0.0  ;;  %v200_v1 = vsub.f32 %v1581_v5, %v199_v62  ;;  %vm415_vm0 = vcmask 56368  }
 0x1f4   :  { %v155_v6 = vadd.f32 %v154_v63, %v93_v37  ;;  %v162_v11 = vmul.f32 %v1592_v18, %v106_v0 }
 0x1f6   :  { %v210_v10 = vmul.f32 %v1615_v39, %v155_v6 }
 0x1f7   :  { %v1630_v52 = vpop.eup %1500 }
 0x1f8   :  { %v187_v55 = vmul.f32 %v1630_v52, %v186_v51  ;;  %v201_v2 = vmul.f32 %v1630_v52, %v200_v1 }
 0x1fa   :  { %v190_v58 = vsel %vm189_vm6, %v187_v55, 0.0  ;;  %v202_v9 = vsel %vm171_vm4, %v201_v2, 0.0  ;;  %vm537_vm6 = vcmask 72768  }
 0x1fb   :  { %v191_v59 = vadd.f32 %v190_v58, %v130_v33  ;;  %v203_v12 = vadd.f32 %v202_v9, %v142_v44 }
 0x1fd   :  { %192 = vst [vmem:[#allocation1] sm:$0xff] %v191_v59 }
 0x204   :  { %v1643_v3 = vld [vmem:[#allocation1 + $0x3] ss:$0 sm:$0xff] }
 0x205   :  { %v244_v7 = vmul.f32 %v1643_v3, %v191_v59  ;;  %v237_v8 = vmul.f32 %v1643_v3, %v1643_v3  ;;  %v258_v13 = vmul.f32 %v1643_v3, %v203_v12 }
 0x207   :  { %245 = vadd.xlane.f32.xlu1 %v244_v7  ;;  %238 = vadd.xlane.f32.xlu0 %v237_v8 }
 0x20b   :  { %211 = vadd.xlane.f32.xlu1 %v210_v10  ;;  %163 = vadd.xlane.f32.xlu0 %v162_v11 }
 0x20f   :  { %259 = vadd.xlane.f32.xlu0 %v258_v13 }
 0x294   :  { %v239_v15 = vpop.xlane.xlu0 %238  ;;  %v246_v17 = vpop.xlane.xlu1 %245 }
 0x295   :  { %v240_v16 = vsub.f32 %v236_v14, %v239_v15  ;;  %v247_v19 = vsub.f32 %v1575_v4, %v246_v17  ;;  %v358_v15 = vld [vmem:[#allocation0 + $0x5] ss:$0 sm:$0xff] }
 0x297   :  { %1502 = vrsqrt.f32 %v240_v16 }
 0x298   :  { %v164_v18 = vpop.xlane.xlu0 %163  ;;  %v212_v21 = vpop.xlane.xlu1 %211 }
 0x299   :  { %v165_v25 = vsub.f32 %v1626_v46, %v164_v18  ;;  %v213_v26 = vsub.f32 %v1601_v22, %v212_v21 }
 0x29b   :  { %v166_v29 = vmul.f32 %v1605_v28, %v165_v25  ;;  %v214_v30 = vmul.f32 %v1630_v52, %v213_v26 }
 0x29c   :  { %v260_v31 = vpop.xlane.xlu0 %259 }
 0x29d   :  { %v167_v32 = vsel %vm110_vm1, %v166_v29, 0.0  ;;  %v215_v33 = vsel %vm171_vm4, %v214_v30, 0.0  ;;  %v261_v34 = vsub.f32 %v1581_v5, %v260_v31  ;;  %vm432_vm1 = vcmask 1047558  }
 0x29e   :  { %v168_v37 = vadd.f32 %v167_v32, %v106_v0  ;;  %v216_v38 = vadd.f32 %v215_v33, %v155_v6  ;;  %vm433_vm3 = vmand %vm415_vm0, %vm432_vm1 }
 0x2a0   :  { %v223_v42 = vmul.f32 %v1615_v39, %v168_v37  ;;  %v271_v43 = vmul.f32 %v1643_v3, %v216_v38 }
 0x2a1   :  { %v1653_v20 = vpop.eup %1502 }
 0x2a2   :  { %v248_v23 = vmul.f32 %v1653_v20, %v247_v19  ;;  %v262_v35 = vmul.f32 %v1653_v20, %v261_v34 }
 0x2a4   :  { %v251_v24 = vsel %vm250_vm9, %v248_v23, 0.0  ;;  %v263_v41 = vsel %vm232_vm7, %v262_v35, 0.0 }
 0x2a5   :  { %v252_v27 = vadd.f32 %v251_v24, %v191_v59  ;;  %v264_v44 = vadd.f32 %v263_v41, %v203_v12 }
 0x2a7   :  { %253 = vst [vmem:[#allocation1] sm:$0xff] %v252_v27 }
 0x2ae   :  { %v1666_v36 = vld [vmem:[#allocation1 + $0x4] ss:$0 sm:$0xff] }
 0x2af   :  { %v305_v40 = vmul.f32 %v1666_v36, %v252_v27  ;;  %v298_v28 = vmul.f32 %v1666_v36, %v1666_v36  ;;  %v319_v45 = vmul.f32 %v1666_v36, %v264_v44 }
 0x2b1   :  { %306 = vadd.xlane.f32.xlu0 %v305_v40  ;;  %299 = vadd.xlane.f32.xlu1 %v298_v28 }
 0x2b5   :  { %224 = vadd.xlane.f32.xlu1 %v223_v42  ;;  %272 = vadd.xlane.f32.xlu0 %v271_v43 }
 0x2b9   :  { %320 = vadd.xlane.f32.xlu1 %v319_v45 }
 0x33e   :  { %v300_v48 = vpop.xlane.xlu1 %299  ;;  %v307_v50 = vpop.xlane.xlu0 %306 }
 0x33f   :  { %v301_v49 = vsub.f32 %v297_v47, %v300_v48  ;;  %v308_v51 = vsub.f32 %v1575_v4, %v307_v50  ;;  %v419_v48 = vld [vmem:[#allocation0 + $0x6] ss:$0 sm:$0xff] }
 0x341   :  { %1504 = vrsqrt.f32 %v301_v49 }
 0x342   :  { %v273_v39 = vpop.xlane.xlu0 %272  ;;  %v225_v54 = vpop.xlane.xlu1 %224 }
 0x343   :  { %v274_v56 = vsub.f32 %v1601_v22, %v273_v39  ;;  %v226_v57 = vsub.f32 %v1626_v46, %v225_v54 }
 0x345   :  { %v275_v60 = vmul.f32 %v1653_v20, %v274_v56  ;;  %v227_v61 = vmul.f32 %v1630_v52, %v226_v57 }
 0x346   :  { %v321_v62 = vpop.xlane.xlu1 %320 }
 0x347   :  { %v276_v63 = vsel %vm232_vm7, %v275_v60, 0.0  ;;  %v228_v0 = vsel %vm171_vm4, %v227_v61, 0.0  ;;  %v322_v1 = vsub.f32 %v1581_v5, %v321_v62  ;;  %vm476_vm4 = vcmask 64568  }
 0x348   :  { %v277_v7 = vadd.f32 %v276_v63, %v216_v38  ;;  %v229_v8 = vadd.f32 %v228_v0, %v168_v37 }
 0x34a   :  { %v332_v11 = vmul.f32 %v1666_v36, %v277_v7  ;;  %v284_v12 = vmul.f32 %v1643_v3, %v229_v8 }
 0x34b   :  { %v1676_v53 = vpop.eup %1504 }
 0x34c   :  { %v309_v55 = vmul.f32 %v1676_v53, %v308_v51  ;;  %v323_v2 = vmul.f32 %v1676_v53, %v322_v1 }
 0x34e   :  { %v312_v58 = vsel %vm311_vm12, %v309_v55, 0.0  ;;  %v324_v52 = vsel %vm293_vm10, %v323_v2, 0.0 }
 0x34f   :  { %v313_v59 = vadd.f32 %v312_v58, %v252_v27  ;;  %v325_v13 = vadd.f32 %v324_v52, %v264_v44 }
 0x351   :  { %314 = vst [vmem:[#allocation1] sm:$0xff] %v313_v59 }
 0x358   :  { %v1689_v6 = vld [vmem:[#allocation1 + $0x5] ss:$0 sm:$0xff] }
 0x359   :  { %v366_v9 = vmul.f32 %v1689_v6, %v313_v59  ;;  %v359_v10 = vmul.f32 %v1689_v6, %v1689_v6  ;;  %v380_v14 = vmul.f32 %v1689_v6, %v325_v13 }
 0x35b   :  { %367 = vadd.xlane.f32.xlu1 %v366_v9  ;;  %360 = vadd.xlane.f32.xlu0 %v359_v10 }
 0x35f   :  { %333 = vadd.xlane.f32.xlu1 %v332_v11  ;;  %285 = vadd.xlane.f32.xlu0 %v284_v12 }
 0x363   :  { %381 = vadd.xlane.f32.xlu0 %v380_v14 }
 0x3e8   :  { %v361_v16 = vpop.xlane.xlu0 %360  ;;  %v368_v19 = vpop.xlane.xlu1 %367 }
 0x3e9   :  { %v362_v17 = vsub.f32 %v358_v15, %v361_v16  ;;  %v369_v18 = vsub.f32 %v1575_v4, %v368_v19 }
 0x3eb   :  { %1506 = vrsqrt.f32 %v362_v17 }
 0x3ec   :  { %v286_v3 = vpop.xlane.xlu0 %285  ;;  %v334_v23 = vpop.xlane.xlu1 %333 }
 0x3ed   :  { %v287_v26 = vsub.f32 %v1626_v46, %v286_v3  ;;  %v335_v27 = vsub.f32 %v1601_v22, %v334_v23 }
 0x3ef   :  { %v288_v30 = vmul.f32 %v1653_v20, %v287_v26  ;;  %v336_v31 = vmul.f32 %v1676_v53, %v335_v27 }
 0x3f0   :  { %v382_v32 = vpop.xlane.xlu0 %381 }
 0x3f1   :  { %v289_v33 = vsel %vm232_vm7, %v288_v30, 0.0  ;;  %v337_v34 = vsel %vm293_vm10, %v336_v31, 0.0  ;;  %v383_v35 = vsub.f32 %v1581_v5, %v382_v32  ;;  %vm586_vm7 = vcmask 80968  }
 0x3f2   :  { %v290_v40 = vadd.f32 %v289_v33, %v229_v8  ;;  %v338_v28 = vadd.f32 %v337_v34, %v277_v7  ;;  %vm606_vm9 = vmand %vm586_vm7, %vm127_vm2 }
 0x3f4   :  { %v345_v43 = vmul.f32 %v1666_v36, %v290_v40  ;;  %v393_v44 = vmul.f32 %v1689_v6, %v338_v28 }
 0x3f5   :  { %v1699_v21 = vpop.eup %1506 }
 0x3f6   :  { %v370_v24 = vmul.f32 %v1699_v21, %v369_v18  ;;  %v384_v37 = vmul.f32 %v1699_v21, %v383_v35  ;;  %v480_v18 = vld [vmem:[#allocation0 + $0x7] ss:$0 sm:$0xff] }
 0x3f8   :  { %v373_v25 = vsel %vm372_vm15, %v370_v24, 0.0  ;;  %v385_v20 = vsel %vm354_vm13, %v384_v37, 0.0 }
 0x3f9   :  { %v374_v29 = vadd.f32 %v373_v25, %v313_v59  ;;  %v386_v45 = vadd.f32 %v385_v20, %v325_v13 }
 0x3fb   :  { %375 = vst [vmem:[#allocation1] sm:$0xff] %v374_v29 }
 0x402   :  { %v417_v38 = vld [vmem:[#allocation1 + $0x6] ss:$0 sm:$0xff] }
 0x403   :  { %v427_v41 = vmul.f32 %v417_v38, %v374_v29  ;;  %v420_v42 = vmul.f32 %v417_v38, %v417_v38  ;;  %v441_v47 = vmul.f32 %v417_v38, %v386_v45 }
 0x405   :  { %428 = vadd.xlane.f32.xlu0 %v427_v41  ;;  %421 = vadd.xlane.f32.xlu1 %v420_v42 }
 0x409   :  { %346 = vadd.xlane.f32.xlu1 %v345_v43  ;;  %394 = vadd.xlane.f32.xlu0 %v393_v44 }
 0x40d   :  { %442 = vadd.xlane.f32.xlu1 %v441_v47 }
 0x492   :  { %v422_v49 = vpop.xlane.xlu1 %421  ;;  %v429_v54 = vpop.xlane.xlu0 %428 }
 0x493   :  { %v423_v50 = vsub.f32 %v419_v48, %v422_v49  ;;  %v430_v57 = vsub.f32 %v1575_v4, %v429_v54 }
 0x495   :  { %1508 = vrsqrt.f32 %v423_v50 }
 0x496   :  { %v347_v51 = vpop.xlane.xlu1 %346  ;;  %v395_v60 = vpop.xlane.xlu0 %394 }
 0x497   :  { %v348_v39 = vsub.f32 %v1626_v46, %v347_v51  ;;  %v396_v63 = vsub.f32 %v1601_v22, %v395_v60 }
 0x499   :  { %v349_v55 = vmul.f32 %v1676_v53, %v348_v39  ;;  %v397_v4 = vmul.f32 %v1699_v21, %v396_v63  ;;  %v541_v39 = vld [vmem:[#allocation0 + $0x8] ss:$0 sm:$0xff] }
 0x49a   :  { %v443_v61 = vpop.xlane.xlu1 %442 }
 0x49b   :  { %v350_v56 = vsel %vm293_vm10, %v349_v55, 0.0  ;;  %v444_v0 = vsub.f32 %v1581_v5, %v443_v61  ;;  %v398_v7 = vsel %vm354_vm13, %v397_v4, 0.0  ;;  %vm637_vm10 = vcmask 89168  }
 0x49c   :  { %v351_v36 = vadd.f32 %v350_v56, %v290_v40  ;;  %v399_v10 = vadd.f32 %v398_v7, %v338_v28  ;;  %vm657_vm12 = vmand %vm637_vm10, %vm188_vm5 }
 0x49e   :  { %v406_v58 = vmul.f32 %v1689_v6, %v351_v36  ;;  %v454_v12 = vmul.f32 %v417_v38, %v399_v10 }
 0x49f   :  { %v1509_v59 = vpop.eup %1508 }
 0x4a0   :  { %v431_v62 = vmul.f32 %v1509_v59, %v430_v57  ;;  %407 = vadd.xlane.f32.xlu1 %v406_v58  ;;  %v445_v2 = vmul.f32 %v1509_v59, %v444_v0 }
 0x4a2   :  { %v434_v53 = vsel %vm433_vm3, %v431_v62, 0.0  ;;  %v446_v6 = vsel %vm415_vm0, %v445_v2, 0.0 }
 0x4a3   :  { %v435_v1 = vadd.f32 %v434_v53, %v374_v29  ;;  %v447_v8 = vadd.f32 %v446_v6, %v386_v45 }
 0x4a5   :  { %436 = vst [vmem:[#allocation1] sm:$0xff] %v435_v1 }
 0x4ac   :  { %v478_v9 = vld [vmem:[#allocation1 + $0x7] ss:$0 sm:$0xff] }
 0x4ad   :  { %v481_v52 = vmul.f32 %v478_v9, %v478_v9  ;;  %v502_v11 = vmul.f32 %v478_v9, %v447_v8 }
 0x4af   :  { %482 = vadd.xlane.f32.xlu0 %v481_v52  ;;  %503 = vadd.xlane.f32.xlu1 %v502_v11 }
 0x4b3   :  { %455 = vadd.xlane.f32.xlu0 %v454_v12  ;;  %v590_v12 = vld [vmem:[#allocation0 + $0x9] ss:$0 sm:$0xff] }
 0x52d   :  { %v408_v13 = vpop.xlane.xlu1 %407 }
 0x52e   :  { %v409_v14 = vsub.f32 %v1626_v46, %v408_v13 }
 0x530   :  { %v410_v15 = vmul.f32 %v1699_v21, %v409_v14 }
 0x532   :  { %v411_v16 = vsel %vm354_vm13, %v410_v15, 0.0  ;;  %vm688_vm13 = vcmask 97368  }
 0x533   :  { %v412_v17 = vadd.f32 %v411_v16, %v351_v36  ;;  %vm708_vm15 = vmand %vm688_vm13, %vm249_vm8 }
 0x535   :  { %v467_v19 = vmul.f32 %v417_v38, %v412_v17 }
 0x537   :  { %468 = vadd.xlane.f32.xlu0 %v467_v19 }
 0x53c   :  { %v483_v3 = vpop.xlane.xlu0 %482  ;;  %v504_v27 = vpop.xlane.xlu1 %503 }
 0x53d   :  { %v484_v23 = vsub.f32 %v480_v18, %v483_v3  ;;  %v505_v31 = vsub.f32 %v1581_v5, %v504_v27 }
 0x53f   :  { %1510 = vrsqrt.f32 %v484_v23 }
 0x540   :  { %v456_v24 = vpop.xlane.xlu0 %455 }
 0x541   :  { %v457_v25 = vsub.f32 %v1601_v22, %v456_v24 }
 0x543   :  { %v458_v26 = vmul.f32 %v1509_v59, %v457_v25 }
 0x545   :  { %v459_v29 = vsel %vm415_vm0, %v458_v26, 0.0 }
 0x546   :  { %v460_v30 = vadd.f32 %v459_v29, %v399_v10 }
 0x548   :  { %v515_v21 = vmul.f32 %v478_v9, %v460_v30 }
 0x549   :  { %v1733_v32 = vpop.eup %1510 }
 0x54a   :  { %v506_v33 = vmul.f32 %v1733_v32, %v505_v31  ;;  %516 = vadd.xlane.f32.xlu1 %v515_v21 }
 0x54c   :  { %v507_v34 = vsel %vm476_vm4, %v506_v33, 0.0 }
 0x54d   :  { %v508_v35 = vadd.f32 %v507_v34, %v447_v8 }
 0x54f   :  { %510 = vst [vmem:[#allocation1 + $0x8] sm:$0xff] %v508_v35 }
 0x556   :  { %v539_v37 = vld [vmem:[#allocation1 + $0x8] ss:$0 sm:$0xff] }
 0x557   :  { %v551_v38 = vmul.f32 %v539_v37, %v508_v35  ;;  %v542_v40 = vmul.f32 %v539_v37, %v539_v37 }
 0x559   :  { %552 = vadd.xlane.f32.xlu1 %v551_v38  ;;  %543 = vadd.xlane.f32.xlu0 %v542_v40 }
 0x5c4   :  { %v469_v28 = vpop.xlane.xlu0 %468 }
 0x5c5   :  { %v470_v41 = vsub.f32 %v1626_v46, %v469_v28  ;;  %v641_v28 = vld [vmem:[#allocation0 + $0xa] ss:$0 sm:$0xff] }
 0x5c7   :  { %v471_v42 = vmul.f32 %v1509_v59, %v470_v41 }
 0x5c9   :  { %v472_v20 = vsel %vm415_vm0, %v471_v42, 0.0  ;;  %vm739_vm0 = vcmask 105568  }
 0x5ca   :  { %v473_v43 = vadd.f32 %v472_v20, %v412_v17  ;;  %vm759_vm3 = vmand %vm739_vm0, %vm310_vm11 }
 0x5cc   :  { %v528_v44 = vmul.f32 %v478_v9, %v473_v43 }
 0x5ce   :  { %529 = vadd.xlane.f32.xlu0 %v528_v44 }
 0x5d7   :  { %v517_v45 = vpop.xlane.xlu1 %516 }
 0x5d8   :  { %v518_v47 = vsub.f32 %v1601_v22, %v517_v45 }
 0x5da   :  { %v519_v48 = vmul.f32 %v1733_v32, %v518_v47 }
 0x5dc   :  { %v520_v49 = vsel %vm476_vm4, %v519_v48, 0.0 }
 0x5dd   :  { %v521_v50 = vadd.f32 %v520_v49, %v460_v30 }
 0x5df   :  { %v564_v51 = vmul.f32 %v539_v37, %v521_v50 }
 0x5e1   :  { %565 = vadd.xlane.f32.xlu1 %v564_v51 }
 0x5e6   :  { %v544_v54 = vpop.xlane.xlu0 %543  ;;  %v553_v56 = vpop.xlane.xlu1 %552 }
 0x5e7   :  { %v545_v55 = vsub.f32 %v541_v39, %v544_v54  ;;  %v554_v36 = vsub.f32 %v1581_v5, %v553_v56 }
 0x5e9   :  { %1512 = vrsqrt.f32 %v545_v55 }
 0x5f3   :  { %v1513_v57 = vpop.eup %1512 }
 0x5f4   :  { %v555_v58 = vmul.f32 %v1513_v57, %v554_v36 }
 0x5f6   :  { %v556_v59 = vsel %vm537_vm6, %v555_v58, 0.0 }
 0x5f7   :  { %v557_v60 = vadd.f32 %v556_v59, %v508_v35 }
 0x5f9   :  { %559 = vst [vmem:[#allocation1 + $0x8] sm:$0xff] %v557_v60 }
 0x600   :  { %v588_v61 = vld [vmem:[#allocation1 + $0x9] ss:$0 sm:$0xff] }
 0x601   :  { %v600_v62 = vmul.f32 %v588_v61, %v557_v60  ;;  %v591_v63 = vmul.f32 %v588_v61, %v588_v61 }
 0x603   :  { %601 = vadd.xlane.f32.xlu1 %v600_v62  ;;  %592 = vadd.xlane.f32.xlu0 %v591_v63 }
 0x65b   :  { %v530_v53 = vpop.xlane.xlu0 %529 }
 0x65c   :  { %v531_v0 = vsub.f32 %v1626_v46, %v530_v53  ;;  %v692_v53 = vld [vmem:[#allocation0 + $0xb] ss:$0 sm:$0xff] }
 0x65e   :  { %v532_v1 = vmul.f32 %v1733_v32, %v531_v0 }
 0x660   :  { %v533_v2 = vsel %vm476_vm4, %v532_v1, 0.0 }
 0x661   :  { %v534_v4 = vadd.f32 %v533_v2, %v473_v43 }
 0x663   :  { %v577_v6 = vmul.f32 %v539_v37, %v534_v4 }
 0x665   :  { %578 = vadd.xlane.f32.xlu0 %v577_v6 }
 0x66e   :  { %v566_v7 = vpop.xlane.xlu1 %565 }
 0x66f   :  { %v567_v8 = vsub.f32 %v1601_v22, %v566_v7 }
 0x671   :  { %v568_v9 = vmul.f32 %v1513_v57, %v567_v8 }
 0x673   :  { %v569_v10 = vsel %vm537_vm6, %v568_v9, 0.0 }
 0x674   :  { %v570_v52 = vadd.f32 %v569_v10, %v521_v50 }
 0x676   :  { %v615_v11 = vmul.f32 %v588_v61, %v570_v52 }
 0x678   :  { %616 = vadd.xlane.f32.xlu1 %v615_v11 }
 0x690   :  { %v593_v13 = vpop.xlane.xlu0 %592  ;;  %v602_v15 = vpop.xlane.xlu1 %601 }
 0x691   :  { %v594_v14 = vsub.f32 %v590_v12, %v593_v13  ;;  %v603_v16 = vsub.f32 %v1581_v5, %v602_v15 }
 0x693   :  { %1514 = vrsqrt.f32 %v594_v14 }
 0x69d   :  { %v1515_v17 = vpop.eup %1514 }
 0x69e   :  { %v604_v19 = vmul.f32 %v1515_v17, %v603_v16 }
 0x6a0   :  { %v607_v18 = vsel %vm606_vm9, %v604_v19, 0.0  ;;  %vm841_vm9 = vcmask 121968  }
 0x6a1   :  { %v608_v3 = vadd.f32 %v607_v18, %v557_v60 }
 0x6a3   :  { %610 = vst [vmem:[#allocation1 + $0x8] sm:$0xff] %v608_v3 }
 0x6aa   :  { %v639_v23 = vld [vmem:[#allocation1 + $0xa] ss:$0 sm:$0xff] }
 0x6ab   :  { %v651_v24 = vmul.f32 %v639_v23, %v608_v3  ;;  %v642_v25 = vmul.f32 %v639_v23, %v639_v23 }
 0x6ad   :  { %652 = vadd.xlane.f32.xlu1 %v651_v24  ;;  %643 = vadd.xlane.f32.xlu0 %v642_v25  ;;  %v743_v25 = vld [vmem:[#allocation0 + $0xc] ss:$0 sm:$0xff] }
 0x6f2   :  { %v579_v26 = vpop.xlane.xlu0 %578 }
 0x6f3   :  { %v580_v27 = vsub.f32 %v1626_v46, %v579_v26 }
 0x6f5   :  { %v581_v29 = vmul.f32 %v1513_v57, %v580_v27 }
 0x6f7   :  { %v582_v30 = vsel %vm537_vm6, %v581_v29, 0.0  ;;  %v1770_v29 = vld [vmem:[#allocation0 + $0x8] sm:$0xff]  ;;  %vm790_vm6 = vcmask 113768  }
 0x6f8   :  { %v583_v31 = vadd.f32 %v582_v30, %v534_v4 }
 0x6fa   :  { %v628_v21 = vmul.f32 %v588_v61, %v583_v31 }
 0x6fc   :  { %629 = vadd.xlane.f32.xlu0 %v628_v21 }
 0x705   :  { %v617_v33 = vpop.xlane.xlu1 %616 }
 0x706   :  { %v618_v34 = vsub.f32 %v1601_v22, %v617_v33 }
 0x708   :  { %v619_v35 = vmul.f32 %v1515_v17, %v618_v34 }
 0x70a   :  { %v620_v37 = vsel %vm586_vm7, %v619_v35, 0.0 }
 0x70b   :  { %v621_v38 = vadd.f32 %v620_v37, %v570_v52 }
 0x70d   :  { %v666_v40 = vmul.f32 %v639_v23, %v621_v38 }
 0x70f   :  { %667 = vadd.xlane.f32.xlu1 %v666_v40 }
 0x73a   :  { %v644_v41 = vpop.xlane.xlu0 %643  ;;  %v653_v20 = vpop.xlane.xlu1 %652 }
 0x73b   :  { %v645_v42 = vsub.f32 %v641_v28, %v644_v41  ;;  %v654_v43 = vsub.f32 %v1581_v5, %v653_v20 }
 0x73d   :  { %1516 = vrsqrt.f32 %v645_v42 }
 0x747   :  { %v1517_v44 = vpop.eup %1516 }
 0x748   :  { %v655_v45 = vmul.f32 %v1517_v44, %v654_v43 }
 0x74a   :  { %v658_v47 = vsel %vm657_vm12, %v655_v45, 0.0  ;;  %vm892_vm12 = vcmask 130168  }
 0x74b   :  { %v659_v48 = vadd.f32 %v658_v47, %v608_v3 }
 0x74d   :  { %661 = vst [vmem:[#allocation1 + $0x8] sm:$0xff] %v659_v48 }
 0x754   :  { %v690_v49 = vld [vmem:[#allocation1 + $0xb] ss:$0 sm:$0xff] }
 0x755   :  { %v702_v50 = vmul.f32 %v690_v49, %v659_v48  ;;  %v693_v51 = vmul.f32 %v690_v49, %v690_v49 }
 0x757   :  { %703 = vadd.xlane.f32.xlu1 %v702_v50  ;;  %694 = vadd.xlane.f32.xlu0 %v693_v51 }
 0x789   :  { %v630_v39 = vpop.xlane.xlu0 %629 }
 0x78a   :  { %v631_v54 = vsub.f32 %v1626_v46, %v630_v39  ;;  %v794_v39 = vld [vmem:[#allocation0 + $0xd] ss:$0 sm:$0xff] }
 0x78c   :  { %v632_v55 = vmul.f32 %v1515_v17, %v631_v54 }
 0x78e   :  { %v633_v56 = vsel %vm586_vm7, %v632_v55, 0.0  ;;  %vm810_vm7 = vmand %vm790_vm6, %vm371_vm14 }
 0x78f   :  { %v634_v36 = vadd.f32 %v633_v56, %v583_v31 }
 0x791   :  { %v679_v57 = vmul.f32 %v639_v23, %v634_v36 }
 0x793   :  { %680 = vadd.xlane.f32.xlu0 %v679_v57 }
 0x79c   :  { %v668_v58 = vpop.xlane.xlu1 %667 }
 0x79d   :  { %v669_v59 = vsub.f32 %v1601_v22, %v668_v58 }
 0x79f   :  { %v670_v60 = vmul.f32 %v1517_v44, %v669_v59 }
 0x7a1   :  { %v671_v61 = vsel %vm637_vm10, %v670_v60, 0.0  ;;  %v1784_v60 = vld [vmem:[#allocation0 + $0x18] sm:$0xff] }
 0x7a2   :  { %v672_v62 = vadd.f32 %v671_v61, %v621_v38 }
 0x7a4   :  { %v717_v63 = vmul.f32 %v690_v49, %v672_v62 }
 0x7a6   :  { %718 = vadd.xlane.f32.xlu1 %v717_v63 }
 0x7e4   :  { %v695_v0 = vpop.xlane.xlu0 %694  ;;  %v704_v2 = vpop.xlane.xlu1 %703 }
 0x7e5   :  { %v696_v1 = vsub.f32 %v692_v53, %v695_v0  ;;  %v705_v4 = vsub.f32 %v1581_v5, %v704_v2 }
 0x7e7   :  { %1518 = vrsqrt.f32 %v696_v1 }
 0x7f1   :  { %v1519_v6 = vpop.eup %1518 }
 0x7f2   :  { %v706_v7 = vmul.f32 %v1519_v6, %v705_v4 }
 0x7f4   :  { %v709_v8 = vsel %vm708_vm15, %v706_v7, 0.0  ;;  %vm979_vm15 = vcmask 146568  }
 0x7f5   :  { %v710_v9 = vadd.f32 %v709_v8, %v659_v48 }
 0x7f7   :  { %712 = vst [vmem:[#allocation1 + $0x8] sm:$0xff] %v710_v9 }
 0x7fe   :  { %v741_v10 = vld [vmem:[#allocation1 + $0xc] ss:$0 sm:$0xff] }
 0x7ff   :  { %v753_v52 = vmul.f32 %v741_v10, %v710_v9  ;;  %v744_v11 = vmul.f32 %v741_v10, %v741_v10 }
 0x801   :  { %754 = vadd.xlane.f32.xlu1 %v753_v52  ;;  %745 = vadd.xlane.f32.xlu0 %v744_v11 }
 0x820   :  { %v681_v12 = vpop.xlane.xlu0 %680 }
 0x821   :  { %v682_v13 = vsub.f32 %v1626_v46, %v681_v12  ;;  %v845_v12 = vld [vmem:[#allocation0 + $0xe] ss:$0 sm:$0xff] }
 0x823   :  { %v683_v14 = vmul.f32 %v1517_v44, %v682_v13  ;;  %v1777_v44 = vld [vmem:[#allocation0 + $0x10] sm:$0xff] }
 0x825   :  { %v684_v15 = vsel %vm637_vm10, %v683_v14, 0.0  ;;  %vm861_vm10 = vmand %vm841_vm9, %vm432_vm1 }
 0x826   :  { %v685_v5 = vadd.f32 %v684_v15, %v634_v36 }
 0x828   :  { %v730_v16 = vmul.f32 %v690_v49, %v685_v5 }
 0x82a   :  { %731 = vadd.xlane.f32.xlu0 %v730_v16 }
 0x833   :  { %v719_v17 = vpop.xlane.xlu1 %718 }
 0x834   :  { %v720_v19 = vsub.f32 %v1601_v22, %v719_v17 }
 0x836   :  { %v721_v18 = vmul.f32 %v1519_v6, %v720_v19 }
 0x838   :  { %v722_v3 = vsel %vm688_vm13, %v721_v18, 0.0 }
 0x839   :  { %v723_v23 = vadd.f32 %v722_v3, %v672_v62 }
 0x83b   :  { %v768_v24 = vmul.f32 %v741_v10, %v723_v23 }
 0x83d   :  { %769 = vadd.xlane.f32.xlu1 %v768_v24 }
 0x88e   :  { %v746_v26 = vpop.xlane.xlu0 %745  ;;  %v755_v30 = vpop.xlane.xlu1 %754 }
 0x88f   :  { %v747_v27 = vsub.f32 %v743_v25, %v746_v26  ;;  %v756_v31 = vsub.f32 %v1770_v29, %v755_v30 }
 0x891   :  { %1520 = vrsqrt.f32 %v747_v27 }
 0x89b   :  { %v1521_v21 = vpop.eup %1520 }
 0x89c   :  { %v757_v22 = vmul.f32 %v1521_v21, %v756_v31 }
 0x89e   :  { %v760_v33 = vsel %vm759_vm3, %v757_v22, 0.0  ;;  %vm1017_vm3 = vcmask 154768  }
 0x89f   :  { %v761_v34 = vadd.f32 %v760_v33, %v710_v9 }
 0x8a1   :  { %763 = vst [vmem:[#allocation1 + $0x8] sm:$0xff] %v761_v34 }
 0x8a8   :  { %v792_v35 = vld [vmem:[#allocation1 + $0xd] ss:$0 sm:$0xff] }
 0x8a9   :  { %v804_v37 = vmul.f32 %v792_v35, %v761_v34  ;;  %v795_v38 = vmul.f32 %v792_v35, %v792_v35 }
 0x8ab   :  { %805 = vadd.xlane.f32.xlu1 %v804_v37  ;;  %796 = vadd.xlane.f32.xlu0 %v795_v38 }
 0x8b7   :  { %v732_v40 = vpop.xlane.xlu0 %731 }
 0x8b8   :  { %v733_v28 = vsub.f32 %v1626_v46, %v732_v40 }
 0x8ba   :  { %v734_v41 = vmul.f32 %v1519_v6, %v733_v28 }
 0x8bc   :  { %v735_v42 = vsel %vm688_vm13, %v734_v41, 0.0  ;;  %vm943_vm13 = vcmask 138368  }
 0x8bd   :  { %v736_v20 = vadd.f32 %v735_v42, %v685_v5 }
 0x8bf   :  { %v781_v43 = vmul.f32 %v741_v10, %v736_v20 }
 0x8c1   :  { %782 = vadd.xlane.f32.xlu0 %v781_v43 }
 0x8ca   :  { %v770_v45 = vpop.xlane.xlu1 %769 }
 0x8cb   :  { %v771_v47 = vsub.f32 %v1777_v44, %v770_v45 }
 0x8cd   :  { %v772_v48 = vmul.f32 %v1521_v21, %v771_v47 }
 0x8cf   :  { %v773_v49 = vsel %vm739_vm0, %v772_v48, 0.0 }
 0x8d0   :  { %v774_v50 = vadd.f32 %v773_v49, %v723_v23 }
 0x8d2   :  { %v819_v51 = vmul.f32 %v792_v35, %v774_v50 }
 0x8d4   :  { %820 = vadd.xlane.f32.xlu1 %v819_v51 }
 0x938   :  { %v797_v54 = vpop.xlane.xlu0 %796  ;;  %v806_v55 = vpop.xlane.xlu1 %805 }
 0x939   :  { %v798_v46 = vsub.f32 %v794_v39, %v797_v54  ;;  %v807_v56 = vsub.f32 %v1770_v29, %v806_v55 }
 0x93b   :  { %1522 = vrsqrt.f32 %v798_v46 }
 0x945   :  { %v1523_v36 = vpop.eup %1522 }
 0x946   :  { %v808_v57 = vmul.f32 %v1523_v36, %v807_v56 }
 0x948   :  { %v811_v58 = vsel %vm810_vm7, %v808_v57, 0.0  ;;  %vm1055_vm7 = vcmask 162968  }
 0x949   :  { %v812_v59 = vadd.f32 %v811_v58, %v761_v34 }
 0x94b   :  { %814 = vst [vmem:[#allocation1 + $0x8] sm:$0xff] %v812_v59 }
 0x94e   :  { %v783_v61 = vpop.xlane.xlu0 %782 }
 0x94f   :  { %v784_v62 = vsub.f32 %v1784_v60, %v783_v61 }
 0x951   :  { %v785_v63 = vmul.f32 %v1521_v21, %v784_v62  ;;  %v947_v62 = vld [vmem:[#allocation0 + $0x10] ss:$0 sm:$0xff] }
 0x952   :  { %v843_v53 = vld [vmem:[#allocation1 + $0xe] ss:$0 sm:$0xff] }
 0x953   :  { %v855_v0 = vmul.f32 %v843_v53, %v812_v59  ;;  %v846_v1 = vmul.f32 %v843_v53, %v843_v53  ;;  %v786_v2 = vsel %vm739_vm0, %v785_v63, 0.0  ;;  %vm999_vm0 = vmand %vm979_vm15, %vm127_vm2 }
 0x954   :  { %v787_v4 = vadd.f32 %v786_v2, %v736_v20  ;;  %v896_v20 = vld [vmem:[#allocation0 + $0xf] ss:$0 sm:$0xff] }
 0x955   :  { %856 = vadd.xlane.f32.xlu1 %v855_v0  ;;  %847 = vadd.xlane.f32.xlu0 %v846_v1 }
 0x956   :  { %v832_v6 = vmul.f32 %v792_v35, %v787_v4 }
 0x959   :  { %833 = vadd.xlane.f32.xlu0 %v832_v6 }
 0x961   :  { %v821_v7 = vpop.xlane.xlu1 %820 }
 0x962   :  { %v822_v8 = vsub.f32 %v1777_v44, %v821_v7 }
 0x964   :  { %v823_v9 = vmul.f32 %v1523_v36, %v822_v8 }
 0x966   :  { %v824_v10 = vsel %vm790_vm6, %v823_v9, 0.0 }
 0x967   :  { %v825_v52 = vadd.f32 %v824_v10, %v774_v50 }
 0x969   :  { %v870_v11 = vmul.f32 %v843_v53, %v825_v52 }
 0x96b   :  { %871 = vadd.xlane.f32.xlu1 %v870_v11 }
 0x9e2   :  { %v848_v13 = vpop.xlane.xlu0 %847  ;;  %v857_v17 = vpop.xlane.xlu1 %856 }
 0x9e3   :  { %v849_v14 = vsub.f32 %v845_v12, %v848_v13  ;;  %v858_v3 = vsub.f32 %v1770_v29, %v857_v17 }
 0x9e5   :  { %1524 = vrsqrt.f32 %v849_v14 }
 0x9e6   :  { %v834_v15 = vpop.xlane.xlu0 %833 }
 0x9e7   :  { %v835_v5 = vsub.f32 %v1784_v60, %v834_v15 }
 0x9e9   :  { %v836_v16 = vmul.f32 %v1523_v36, %v835_v5  ;;  %v983_v5 = vld [vmem:[#allocation0 + $0x11] ss:$0 sm:$0xff] }
 0x9eb   :  { %v837_v19 = vsel %vm790_vm6, %v836_v16, 0.0  ;;  %vm1037_vm6 = vmand %vm1017_vm3, %vm188_vm5 }
 0x9ec   :  { %v838_v18 = vadd.f32 %v837_v19, %v787_v4 }
 0x9ee   :  { %v883_v23 = vmul.f32 %v843_v53, %v838_v18 }
 0x9ef   :  { %v1525_v24 = vpop.eup %1524 }
 0x9f0   :  { %v859_v25 = vmul.f32 %v1525_v24, %v858_v3  ;;  %884 = vadd.xlane.f32.xlu1 %v883_v23 }
 0x9f2   :  { %v862_v26 = vsel %vm861_vm10, %v859_v25, 0.0  ;;  %vm1093_vm10 = vcmask 171168  }
 0x9f3   :  { %v1795_v27 = vadd.f32 %v862_v26, %v812_v59 }
 0x9f5   :  { %865 = vst [vmem:[#allocation1 + $0x8] sm:$0xff] %v1795_v27 }
 0x9f8   :  { %v872_v30 = vpop.xlane.xlu1 %871 }
 0x9f9   :  { %v873_v31 = vsub.f32 %v1777_v44, %v872_v30 }
 0x9fb   :  { %v874_v21 = vmul.f32 %v1525_v24, %v873_v31 }
 0x9fc   :  { %v1799_v22 = vld [vmem:[#allocation1 + $0xf] ss:$0 sm:$0xff] }
 0x9fd   :  { %v897_v29 = vmul.f32 %v1799_v22, %v1799_v22  ;;  %v875_v33 = vsel %vm841_vm9, %v874_v21, 0.0 }
 0x9fe   :  { %v876_v34 = vadd.f32 %v875_v33, %v825_v52 }
 0x9ff   :  { %898 = vadd.xlane.f32.xlu0 %v897_v29 }
 0xa00   :  { %v921_v35 = vmul.f32 %v1799_v22, %v876_v34 }
 0xa03   :  { %922 = vadd.xlane.f32.xlu0 %v921_v35 }
 0xa7d   :  { %v885_v37 = vpop.xlane.xlu1 %884 }
 0xa7e   :  { %v886_v38 = vsub.f32 %v1784_v60, %v885_v37 }
 0xa80   :  { %v887_v40 = vmul.f32 %v1525_v24, %v886_v38  ;;  %v1021_v38 = vld [vmem:[#allocation0 + $0x12] ss:$0 sm:$0xff] }
 0xa82   :  { %v888_v28 = vsel %vm841_vm9, %v887_v40, 0.0  ;;  %vm1075_vm9 = vmand %vm1055_vm7, %vm249_vm8 }
 0xa83   :  { %v889_v41 = vadd.f32 %v888_v28, %v838_v18 }
 0xa85   :  { %v934_v42 = vmul.f32 %v1799_v22, %v889_v41 }
 0xa87   :  { %935 = vadd.xlane.f32.xlu1 %v934_v42 }
 0xa8c   :  { %v899_v43 = vpop.xlane.xlu0 %898 }
 0xa8d   :  { %v900_v45 = vsub.f32 %v896_v20, %v899_v43 }
 0xa8f   :  { %1526 = vrsqrt.f32 %v900_v45 }
 0xa90   :  { %v923_v47 = vpop.xlane.xlu0 %922 }
 0xa91   :  { %v924_v48 = vsub.f32 %v1777_v44, %v923_v47 }
 0xa99   :  { %v1809_v49 = vpop.eup %1526 }
 0xa9a   :  { %v925_v50 = vmul.f32 %v1809_v49, %v924_v48 }
 0xa9c   :  { %v926_v51 = vsel %vm892_vm12, %v925_v50, 0.0 }
 0xa9d   :  { %v927_v39 = vadd.f32 %v926_v51, %v876_v34 }
 0xa9f   :  { %929 = vst [vmem:[#allocation1 + $0x10] sm:$0xff] %v927_v39 }
 0xaa6   :  { %v945_v54 = vld [vmem:[#allocation1 + $0x10] ss:$0 sm:$0xff] }
 0xaa7   :  { %v948_v46 = vmul.f32 %v945_v54, %v945_v54  ;;  %v957_v55 = vmul.f32 %v945_v54, %v927_v39 }
 0xaa9   :  { %949 = vadd.xlane.f32.xlu0 %v948_v46  ;;  %958 = vadd.xlane.f32.xlu1 %v957_v55 }
 0xb14   :  { %v936_v56 = vpop.xlane.xlu1 %935 }
 0xb15   :  { %v937_v36 = vsub.f32 %v1784_v60, %v936_v56 }
 0xb17   :  { %v938_v57 = vmul.f32 %v1809_v49, %v937_v36 }
 0xb19   :  { %v939_v58 = vsel %vm892_vm12, %v938_v57, 0.0  ;;  %v1059_v57 = vld [vmem:[#allocation0 + $0x13] ss:$0 sm:$0xff] }
 0xb1a   :  { %v940_v59 = vadd.f32 %v939_v58, %v889_v41 }
 0xb1c   :  { %v970_v61 = vmul.f32 %v945_v54, %v940_v59 }
 0xb1e   :  { %971 = vadd.xlane.f32.xlu0 %v970_v61 }
 0xb36   :  { %v950_v63 = vpop.xlane.xlu0 %949  ;;  %v959_v0 = vpop.xlane.xlu1 %958 }
 0xb37   :  { %v951_v53 = vsub.f32 %v947_v62, %v950_v63  ;;  %v960_v1 = vsub.f32 %v1777_v44, %v959_v0 }
 0xb39   :  { %1528 = vrsqrt.f32 %v951_v53 }
 0xb43   :  { %v1529_v2 = vpop.eup %1528 }
 0xb44   :  { %v961_v4 = vmul.f32 %v1529_v2, %v960_v1 }
 0xb46   :  { %v962_v6 = vsel %vm943_vm13, %v961_v4, 0.0 }
 0xb47   :  { %v963_v7 = vadd.f32 %v962_v6, %v927_v39 }
 0xb49   :  { %965 = vst [vmem:[#allocation1 + $0x10] sm:$0xff] %v963_v7 }
 0xb50   :  { %v981_v8 = vld [vmem:[#allocation1 + $0x11] ss:$0 sm:$0xff] }
 0xb51   :  { %v993_v9 = vmul.f32 %v981_v8, %v963_v7  ;;  %v984_v10 = vmul.f32 %v981_v8, %v981_v8 }
 0xb53   :  { %994 = vadd.xlane.f32.xlu0 %v993_v9  ;;  %985 = vadd.xlane.f32.xlu1 %v984_v10 }
 0xbab   :  { %v972_v52 = vpop.xlane.xlu0 %971 }
 0xbac   :  { %v973_v11 = vsub.f32 %v1784_v60, %v972_v52 }
 0xbae   :  { %v974_v12 = vmul.f32 %v1529_v2, %v973_v11 }
 0xbb0   :  { %v975_v13 = vsel %vm943_vm13, %v974_v12, 0.0  ;;  %v1097_v12 = vld [vmem:[#allocation0 + $0x14] ss:$0 sm:$0xff]  ;;  %vm1113_vm13 = vmand %vm1093_vm10, %vm310_vm11 }
 0xbb1   :  { %v976_v14 = vadd.f32 %v975_v13, %v940_v59 }
 0xbb3   :  { %v1008_v15 = vmul.f32 %v981_v8, %v976_v14 }
 0xbb5   :  { %1009 = vadd.xlane.f32.xlu1 %v1008_v15 }
 0xbe0   :  { %v986_v16 = vpop.xlane.xlu1 %985  ;;  %v995_v19 = vpop.xlane.xlu0 %994 }
 0xbe1   :  { %v987_v17 = vsub.f32 %v983_v5, %v986_v16  ;;  %v996_v18 = vsub.f32 %v1777_v44, %v995_v19 }
 0xbe3   :  { %1530 = vrsqrt.f32 %v987_v17 }
 0xbed   :  { %v1531_v3 = vpop.eup %1530 }
 0xbee   :  { %v997_v23 = vmul.f32 %v1531_v3, %v996_v18 }
 0xbf0   :  { %v1000_v24 = vsel %vm999_vm0, %v997_v23, 0.0 }
 0xbf1   :  { %v1001_v25 = vadd.f32 %v1000_v24, %v963_v7 }
 0xbf3   :  { %1003 = vst [vmem:[#allocation1 + $0x10] sm:$0xff] %v1001_v25 }
 0xbfa   :  { %v1019_v26 = vld [vmem:[#allocation1 + $0x12] ss:$0 sm:$0xff] }
 0xbfb   :  { %v1031_v30 = vmul.f32 %v1019_v26, %v1001_v25  ;;  %v1022_v31 = vmul.f32 %v1019_v26, %v1019_v26 }
 0xbfd   :  { %1032 = vadd.xlane.f32.xlu1 %v1031_v30  ;;  %1023 = vadd.xlane.f32.xlu0 %v1022_v31 }
 0xc42   :  { %v1010_v21 = vpop.xlane.xlu1 %1009 }
 0xc43   :  { %v1011_v29 = vsub.f32 %v1784_v60, %v1010_v21 }
 0xc45   :  { %v1012_v33 = vmul.f32 %v1531_v3, %v1011_v29 }
 0xc47   :  { %v1013_v34 = vsel %vm979_vm15, %v1012_v33, 0.0  ;;  %v1135_v33 = vld [vmem:[#allocation0 + $0x15] ss:$0 sm:$0xff]  ;;  %vm1131_vm15 = vcmask 179368  }
 0xc48   :  { %v1014_v35 = vadd.f32 %v1013_v34, %v976_v14  ;;  %vm1151_vm0 = vmand %vm1131_vm15, %vm371_vm14 }
 0xc4a   :  { %v1046_v37 = vmul.f32 %v1019_v26, %v1014_v35 }
 0xc4c   :  { %1047 = vadd.xlane.f32.xlu0 %v1046_v37 }
 0xc8a   :  { %v1024_v40 = vpop.xlane.xlu0 %1023  ;;  %v1033_v41 = vpop.xlane.xlu1 %1032 }
 0xc8b   :  { %v1025_v28 = vsub.f32 %v1021_v38, %v1024_v40  ;;  %v1034_v42 = vsub.f32 %v1777_v44, %v1033_v41 }
 0xc8d   :  { %1532 = vrsqrt.f32 %v1025_v28 }
 0xc97   :  { %v1533_v20 = vpop.eup %1532 }
 0xc98   :  { %v1035_v43 = vmul.f32 %v1533_v20, %v1034_v42 }
 0xc9a   :  { %v1038_v45 = vsel %vm1037_vm6, %v1035_v43, 0.0 }
 0xc9b   :  { %v1039_v47 = vadd.f32 %v1038_v45, %v1001_v25 }
 0xc9d   :  { %1041 = vst [vmem:[#allocation1 + $0x10] sm:$0xff] %v1039_v47 }
 0xca4   :  { %v1057_v48 = vld [vmem:[#allocation1 + $0x13] ss:$0 sm:$0xff] }
 0xca5   :  { %v1069_v50 = vmul.f32 %v1057_v48, %v1039_v47  ;;  %v1060_v51 = vmul.f32 %v1057_v48, %v1057_v48 }
 0xca7   :  { %1070 = vadd.xlane.f32.xlu0 %v1069_v50  ;;  %1061 = vadd.xlane.f32.xlu1 %v1060_v51 }
 0xcd9   :  { %v1048_v39 = vpop.xlane.xlu0 %1047 }
 0xcda   :  { %v1049_v54 = vsub.f32 %v1784_v60, %v1048_v39 }
 0xcdc   :  { %v1050_v46 = vmul.f32 %v1533_v20, %v1049_v54 }
 0xcde   :  { %v1051_v55 = vsel %vm1017_vm3, %v1050_v46, 0.0  ;;  %v1173_v46 = vld [vmem:[#allocation0 + $0x16] ss:$0 sm:$0xff]  ;;  %vm1169_vm3 = vcmask 187568  }
 0xcdf   :  { %v1052_v56 = vadd.f32 %v1051_v55, %v1014_v35  ;;  %vm1189_vm6 = vmand %vm1169_vm3, %vm432_vm1 }
 0xce1   :  { %v1084_v36 = vmul.f32 %v1057_v48, %v1052_v56 }
 0xce3   :  { %1085 = vadd.xlane.f32.xlu1 %v1084_v36 }
 0xd34   :  { %v1062_v58 = vpop.xlane.xlu1 %1061  ;;  %v1071_v61 = vpop.xlane.xlu0 %1070 }
 0xd35   :  { %v1063_v59 = vsub.f32 %v1059_v57, %v1062_v58  ;;  %v1072_v62 = vsub.f32 %v1777_v44, %v1071_v61 }
 0xd37   :  { %1534 = vrsqrt.f32 %v1063_v59 }
 0xd41   :  { %v1535_v63 = vpop.eup %1534 }
 0xd42   :  { %v1073_v53 = vmul.f32 %v1535_v63, %v1072_v62 }
 0xd44   :  { %v1076_v0 = vsel %vm1075_vm9, %v1073_v53, 0.0  ;;  %vm1245_vm9 = vcmask 203968  }
 0xd45   :  { %v1077_v1 = vadd.f32 %v1076_v0, %v1039_v47 }
 0xd47   :  { %1079 = vst [vmem:[#allocation1 + $0x10] sm:$0xff] %v1077_v1 }
 0xd4e   :  { %v1095_v2 = vld [vmem:[#allocation1 + $0x14] ss:$0 sm:$0xff] }
 0xd4f   :  { %v1107_v4 = vmul.f32 %v1095_v2, %v1077_v1  ;;  %v1098_v6 = vmul.f32 %v1095_v2, %v1095_v2 }
 0xd51   :  { %1108 = vadd.xlane.f32.xlu1 %v1107_v4  ;;  %1099 = vadd.xlane.f32.xlu0 %v1098_v6 }
 0xd70   :  { %v1086_v7 = vpop.xlane.xlu1 %1085 }
 0xd71   :  { %v1087_v8 = vsub.f32 %v1784_v60, %v1086_v7 }
 0xd73   :  { %v1088_v9 = vmul.f32 %v1535_v63, %v1087_v8  ;;  %v1211_v8 = vld [vmem:[#allocation0 + $0x17] ss:$0 sm:$0xff] }
 0xd75   :  { %v1089_v10 = vsel %vm1055_vm7, %v1088_v9, 0.0  ;;  %vm1207_vm7 = vcmask 195768  }
 0xd76   :  { %v1090_v52 = vadd.f32 %v1089_v10, %v1052_v56 }
 0xd78   :  { %v1122_v11 = vmul.f32 %v1095_v2, %v1090_v52 }
 0xd7a   :  { %1123 = vadd.xlane.f32.xlu0 %v1122_v11 }
 0xdde   :  { %v1100_v13 = vpop.xlane.xlu0 %1099  ;;  %v1109_v15 = vpop.xlane.xlu1 %1108 }
 0xddf   :  { %v1101_v14 = vsub.f32 %v1097_v12, %v1100_v13  ;;  %v1110_v5 = vsub.f32 %v1777_v44, %v1109_v15 }
 0xde1   :  { %1536 = vrsqrt.f32 %v1101_v14 }
 0xdeb   :  { %v1537_v16 = vpop.eup %1536 }
 0xdec   :  { %v1111_v17 = vmul.f32 %v1537_v16, %v1110_v5 }
 0xdee   :  { %v1114_v19 = vsel %vm1113_vm13, %v1111_v17, 0.0 }
 0xdef   :  { %v1115_v18 = vadd.f32 %v1114_v19, %v1077_v1  ;;  %v1249_v19 = vld [vmem:[#allocation0 + $0x18] ss:$0 sm:$0xff] }
 0xdf1   :  { %1117 = vst [vmem:[#allocation1 + $0x10] sm:$0xff] %v1115_v18 }
 0xdf8   :  { %v1133_v3 = vld [vmem:[#allocation1 + $0x15] ss:$0 sm:$0xff] }
 0xdf9   :  { %v1145_v23 = vmul.f32 %v1133_v3, %v1115_v18  ;;  %v1136_v24 = vmul.f32 %v1133_v3, %v1133_v3 }
 0xdfb   :  { %1146 = vadd.xlane.f32.xlu0 %v1145_v23  ;;  %1137 = vadd.xlane.f32.xlu1 %v1136_v24 }
 0xe07   :  { %v1124_v25 = vpop.xlane.xlu0 %1123 }
 0xe08   :  { %v1125_v26 = vsub.f32 %v1784_v60, %v1124_v25 }
 0xe0a   :  { %v1126_v30 = vmul.f32 %v1537_v16, %v1125_v26 }
 0xe0c   :  { %v1127_v31 = vsel %vm1093_vm10, %v1126_v30, 0.0  ;;  %vm1268_vm10 = vcmask 212168  }
 0xe0d   :  { %v1128_v21 = vadd.f32 %v1127_v31, %v1090_v52  ;;  %vm1288_vm13 = vmand %vm1268_vm10, %vm127_vm2  ;;  %vm1393_vm10 = vcmask 253168  }
 0xe0f   :  { %v1160_v29 = vmul.f32 %v1133_v3, %v1128_v21 }
 0xe11   :  { %1161 = vadd.xlane.f32.xlu1 %v1160_v29 }
 0xe88   :  { %v1138_v34 = vpop.xlane.xlu1 %1137  ;;  %v1147_v37 = vpop.xlane.xlu0 %1146 }
 0xe89   :  { %v1139_v35 = vsub.f32 %v1135_v33, %v1138_v34  ;;  %v1148_v38 = vsub.f32 %v1777_v44, %v1147_v37  ;;  %v1272_v34 = vld [vmem:[#allocation0 + $0x19] ss:$0 sm:$0xff] }
 0xe8b   :  { %1538 = vrsqrt.f32 %v1139_v35 }
 0xe95   :  { %v1539_v40 = vpop.eup %1538 }
 0xe96   :  { %v1149_v28 = vmul.f32 %v1539_v40, %v1148_v38 }
 0xe98   :  { %v1152_v41 = vsel %vm1151_vm0, %v1149_v28, 0.0  ;;  %vm1318_vm0 = vcmask 228568  }
 0xe99   :  { %v1153_v42 = vadd.f32 %v1152_v41, %v1115_v18 }
 0xe9b   :  { %1155 = vst [vmem:[#allocation1 + $0x10] sm:$0xff] %v1153_v42 }
 0xe9e   :  { %v1162_v20 = vpop.xlane.xlu1 %1161 }
 0xe9f   :  { %v1163_v43 = vsub.f32 %v1784_v60, %v1162_v20 }
 0xea1   :  { %v1164_v45 = vmul.f32 %v1539_v40, %v1163_v43 }
 0xea2   :  { %v1171_v47 = vld [vmem:[#allocation1 + $0x16] ss:$0 sm:$0xff] }
 0xea3   :  { %v1183_v48 = vmul.f32 %v1171_v47, %v1153_v42  ;;  %v1174_v50 = vmul.f32 %v1171_v47, %v1171_v47  ;;  %v1165_v51 = vsel %vm1131_vm15, %v1164_v45, 0.0  ;;  %vm1293_vm15 = vcmask 220368  }
 0xea4   :  { %v1166_v39 = vadd.f32 %v1165_v51, %v1128_v21  ;;  %vm1313_vm2 = vmand %vm1293_vm15, %vm188_vm5 }
 0xea5   :  { %1184 = vadd.xlane.f32.xlu1 %v1183_v48  ;;  %1175 = vadd.xlane.f32.xlu0 %v1174_v50  ;;  %v1297_v48 = vld [vmem:[#allocation0 + $0x1a] ss:$0 sm:$0xff]  ;;  %vm1338_vm5 = vmand %vm1318_vm0, %vm249_vm8 }
 0xea6   :  { %v1198_v54 = vmul.f32 %v1171_v47, %v1166_v39 }
 0xea9   :  { %1199 = vadd.xlane.f32.xlu0 %v1198_v54 }
 0xf32   :  { %v1176_v55 = vpop.xlane.xlu0 %1175  ;;  %v1185_v36 = vpop.xlane.xlu1 %1184 }
 0xf33   :  { %v1177_v56 = vsub.f32 %v1173_v46, %v1176_v55  ;;  %v1186_v57 = vsub.f32 %v1777_v44, %v1185_v36 }
 0xf35   :  { %1540 = vrsqrt.f32 %v1177_v56 }
 0xf36   :  { %v1200_v59 = vpop.xlane.xlu0 %1199 }
 0xf37   :  { %v1201_v63 = vsub.f32 %v1784_v60, %v1200_v59 }
 0xf3f   :  { %v1541_v58 = vpop.eup %1540 }
 0xf40   :  { %v1187_v61 = vmul.f32 %v1541_v58, %v1186_v57  ;;  %v1202_v0 = vmul.f32 %v1541_v58, %v1201_v63 }
 0xf42   :  { %v1190_v62 = vsel %vm1189_vm6, %v1187_v61, 0.0  ;;  %v1203_v1 = vsel %vm1169_vm3, %v1202_v0, 0.0  ;;  %v1322_v61 = vld [vmem:[#allocation0 + $0x1b] ss:$0 sm:$0xff]  ;;  %vm1343_vm3 = vcmask 236768   ;;  %vm1368_vm6 = vcmask 244968  }
 0xf43   :  { %v1844_v53 = vadd.f32 %v1190_v62, %v1153_v42  ;;  %v1204_v2 = vadd.f32 %v1203_v1, %v1166_v39  ;;  %vm1363_vm8 = vmand %vm1343_vm3, %vm310_vm11 }
 0xf44   :  { %vm1388_vm11 = vmand %vm1368_vm6, %vm371_vm14  ;;  %vm493_vm14 = vcmask 1047559  }
 0xf45   :  { %1193 = vst [vmem:[#allocation1 + $0x10] sm:$0xff] %v1844_v53 }
 0xf4c   :  { %v1847_v4 = vld [vmem:[#allocation1 + $0x17] ss:$0 sm:$0xff] }
 0xf4d   :  { %v1212_v6 = vmul.f32 %v1847_v4, %v1847_v4  ;;  %v1236_v7 = vmul.f32 %v1847_v4, %v1204_v2 }
 0xf4f   :  { %1213 = vadd.xlane.f32.xlu1 %v1212_v6  ;;  %1237 = vadd.xlane.f32.xlu0 %v1236_v7 }
 0xfdc   :  { %v1214_v9 = vpop.xlane.xlu1 %1213  ;;  %v1238_v52 = vpop.xlane.xlu0 %1237 }
 0xfdd   :  { %v1215_v10 = vsub.f32 %v1211_v8, %v1214_v9  ;;  %v1239_v11 = vsub.f32 %v1784_v60, %v1238_v52 }
 0xfdf   :  { %1542 = vrsqrt.f32 %v1215_v10 }
 0xfe9   :  { %v1853_v12 = vpop.eup %1542 }
 0xfea   :  { %v1240_v13 = vmul.f32 %v1853_v12, %v1239_v11  ;;  %v1347_v11 = vld [vmem:[#allocation0 + $0x1c] ss:$0 sm:$0xff] }
 0xfec   :  { %v1241_v14 = vsel %vm1207_vm7, %v1240_v13, 0.0 }
 0xfed   :  { %v1242_v15 = vadd.f32 %v1241_v14, %v1204_v2 }
 0xfef   :  { %1244 = vst [vmem:[#allocation1 + $0x18] sm:$0xff] %v1242_v15 }
 0xff6   :  { %v1247_v5 = vld [vmem:[#allocation1 + $0x18] ss:$0 sm:$0xff] }
 0xff7   :  { %v1259_v16 = vmul.f32 %v1247_v5, %v1242_v15  ;;  %v1250_v17 = vmul.f32 %v1247_v5, %v1247_v5 }
 0xff9   :  { %1260 = vadd.xlane.f32.xlu0 %v1259_v16  ;;  %1251 = vadd.xlane.f32.xlu1 %v1250_v17 }
0x1086   :  { %v1252_v18 = vpop.xlane.xlu1 %1251  ;;  %v1261_v23 = vpop.xlane.xlu0 %1260 }
0x1087   :  { %v1253_v3 = vsub.f32 %v1249_v19, %v1252_v18  ;;  %v1262_v24 = vsub.f32 %v1784_v60, %v1261_v23 }
0x1089   :  { %1544 = vrsqrt.f32 %v1253_v3 }
0x1093   :  { %v1545_v25 = vpop.eup %1544 }
0x1094   :  { %v1263_v26 = vmul.f32 %v1545_v25, %v1262_v24  ;;  %v1372_v25 = vld [vmem:[#allocation0 + $0x1d] ss:$0 sm:$0xff] }
0x1096   :  { %v1264_v30 = vsel %vm1245_vm9, %v1263_v26, 0.0  ;;  %vm494_vm9 = vmand %vm476_vm4, %vm493_vm14 }
0x1097   :  { %v1265_v31 = vadd.f32 %v1264_v30, %v1242_v15  ;;  %vm1413_vm4 = vmand %vm1393_vm10, %vm432_vm1 }
0x1098   :  { %vm912_vm1 = vmand %vm892_vm12, %vm493_vm14 }
0x1099   :  { %1267 = vst [vmem:[#allocation1 + $0x18] sm:$0xff] %v1265_v31 }
0x10a0   :  { %v1270_v21 = vld [vmem:[#allocation1 + $0x19] ss:$0 sm:$0xff] }
0x10a1   :  { %v1282_v29 = vmul.f32 %v1270_v21, %v1265_v31  ;;  %v1273_v33 = vmul.f32 %v1270_v21, %v1270_v21 }
0x10a3   :  { %1283 = vadd.xlane.f32.xlu0 %v1282_v29  ;;  %1274 = vadd.xlane.f32.xlu1 %v1273_v33 }
0x1130   :  { %v1275_v35 = vpop.xlane.xlu1 %1274  ;;  %v1284_v38 = vpop.xlane.xlu0 %1283 }
0x1131   :  { %v1276_v37 = vsub.f32 %v1272_v34, %v1275_v35  ;;  %v1285_v40 = vsub.f32 %v1784_v60, %v1284_v38 }
0x1133   :  { %1546 = vrsqrt.f32 %v1276_v37 }
0x113d   :  { %v1547_v28 = vpop.eup %1546 }
0x113e   :  { %v1286_v41 = vmul.f32 %v1547_v28, %v1285_v40  ;;  %v487_v28 = vld [vmem:[#allocation1] sm:$0xff] }
0x1140   :  { %v1289_v42 = vsel %vm1288_vm13, %v1286_v41, 0.0  ;;  %v1560_v41 = vld [vmem:[#allocation1 + $0x7] ss:$0 sm:$0xff]  ;;  %vm1227_vm13 = vmand %vm1207_vm7, %vm493_vm14  ;;  %vm1418_vm7 = vcmask 261368  }
0x1141   :  { %v1290_v20 = vadd.f32 %v1289_v42, %v1265_v31  ;;  %v488_v42 = vmul.f32 %v1560_v41, %v487_v28  ;;  %vm1438_vm15 = vmand %vm1418_vm7, %vm493_vm14 }
0x1143   :  { %1292 = vst [vmem:[#allocation1 + $0x18] sm:$0xff] %v1290_v20 }
0x114a   :  { %v1295_v43 = vld [vmem:[#allocation1 + $0x1a] ss:$0 sm:$0xff] }
0x114b   :  { %v1307_v45 = vmul.f32 %v1295_v43, %v1290_v20  ;;  %v1298_v47 = vmul.f32 %v1295_v43, %v1295_v43  ;;  %v1397_v43 = vld [vmem:[#allocation0 + $0x1e] ss:$0 sm:$0xff] }
0x114d   :  { %1308 = vadd.xlane.f32.xlu0 %v1307_v45  ;;  %1299 = vadd.xlane.f32.xlu1 %v1298_v47 }
0x11da   :  { %v1300_v50 = vpop.xlane.xlu1 %1299  ;;  %v1309_v39 = vpop.xlane.xlu0 %1308 }
0x11db   :  { %v1301_v51 = vsub.f32 %v1297_v48, %v1300_v50  ;;  %v1310_v54 = vsub.f32 %v1784_v60, %v1309_v39  ;;  %v486_v50 = vld [vmem:[#allocation0] sm:$0xff] }
0x11dd   :  { %1548 = vrsqrt.f32 %v1301_v51 }
0x11e7   :  { %v1549_v46 = vpop.eup %1548 }
0x11e8   :  { %v1311_v55 = vmul.f32 %v1549_v46, %v1310_v54 }
0x11ea   :  { %v1314_v56 = vsel %vm1313_vm2, %v1311_v55, 0.0 }
0x11eb   :  { %v1315_v36 = vadd.f32 %v1314_v56, %v1290_v20  ;;  %v1221_v20 = vmul.f32 %v1847_v4, %v1844_v53 }
0x11ed   :  { %1317 = vst [vmem:[#allocation1 + $0x18] sm:$0xff] %v1315_v36 }
0x11f4   :  { %v1320_v57 = vld [vmem:[#allocation1 + $0x1b] ss:$0 sm:$0xff] }
0x11f5   :  { %v1332_v58 = vmul.f32 %v1320_v57, %v1315_v36  ;;  %v1323_v59 = vmul.f32 %v1320_v57, %v1320_v57 }
0x11f7   :  { %1333 = vadd.xlane.f32.xlu0 %v1332_v58  ;;  %1324 = vadd.xlane.f32.xlu1 %v1323_v59 }
0x1284   :  { %v1325_v62 = vpop.xlane.xlu1 %1324  ;;  %v1334_v0 = vpop.xlane.xlu0 %1333 }
0x1285   :  { %v1326_v63 = vsub.f32 %v1322_v61, %v1325_v62  ;;  %v1335_v1 = vsub.f32 %v1784_v60, %v1334_v0  ;;  %v906_v0 = vmul.f32 %v1799_v22, %v1795_v27 }
0x1287   :  { %1550 = vrsqrt.f32 %v1326_v63 }
0x1291   :  { %v1551_v2 = vpop.eup %1550 }
0x1292   :  { %v1336_v6 = vmul.f32 %v1551_v2, %v1335_v1  ;;  %v1422_v2 = vld [vmem:[#allocation0 + $0x1f] ss:$0 sm:$0xff] }
0x1294   :  { %v1339_v7 = vsel %vm1338_vm5, %v1336_v6, 0.0 }
0x1295   :  { %v1340_v8 = vadd.f32 %v1339_v7, %v1315_v36  ;;  %v903_v7 = vld [vmem:[#allocation0 + $0x8] sm:$0xff] }
0x1297   :  { %1342 = vst [vmem:[#allocation1 + $0x18] sm:$0xff] %v1340_v8 }
0x129e   :  { %v1345_v9 = vld [vmem:[#allocation1 + $0x1c] ss:$0 sm:$0xff] }
0x129f   :  { %v1357_v10 = vmul.f32 %v1345_v9, %v1340_v8  ;;  %v1348_v52 = vmul.f32 %v1345_v9, %v1345_v9 }
0x12a1   :  { %1358 = vadd.xlane.f32.xlu0 %v1357_v10  ;;  %1349 = vadd.xlane.f32.xlu1 %v1348_v52 }
0x132e   :  { %v1350_v13 = vpop.xlane.xlu1 %1349  ;;  %v1359_v15 = vpop.xlane.xlu0 %1358 }
0x132f   :  { %v1351_v14 = vsub.f32 %v1347_v11, %v1350_v13  ;;  %v1360_v5 = vsub.f32 %v1784_v60, %v1359_v15 }
0x1331   :  { %1552 = vrsqrt.f32 %v1351_v14 }
0x133b   :  { %v1553_v16 = vpop.eup %1552 }
0x133c   :  { %v1361_v17 = vmul.f32 %v1553_v16, %v1360_v5 }
0x133e   :  { %v1364_v19 = vsel %vm1363_vm8, %v1361_v17, 0.0 }
0x133f   :  { %v1365_v18 = vadd.f32 %v1364_v19, %v1340_v8 }
0x1341   :  { %1367 = vst [vmem:[#allocation1 + $0x18] sm:$0xff] %v1365_v18 }
0x1348   :  { %v1370_v3 = vld [vmem:[#allocation1 + $0x1d] ss:$0 sm:$0xff] }
0x1349   :  { %v1382_v23 = vmul.f32 %v1370_v3, %v1365_v18  ;;  %v1373_v24 = vmul.f32 %v1370_v3, %v1370_v3 }
0x134b   :  { %1383 = vadd.xlane.f32.xlu0 %v1382_v23  ;;  %1374 = vadd.xlane.f32.xlu1 %v1373_v24 }
0x13d8   :  { %v1375_v26 = vpop.xlane.xlu1 %1374  ;;  %v1384_v31 = vpop.xlane.xlu0 %1383 }
0x13d9   :  { %v1376_v30 = vsub.f32 %v1372_v25, %v1375_v26  ;;  %v1385_v21 = vsub.f32 %v1784_v60, %v1384_v31 }
0x13db   :  { %1554 = vrsqrt.f32 %v1376_v30 }
0x13e5   :  { %v1555_v29 = vpop.eup %1554 }
0x13e6   :  { %v1386_v33 = vmul.f32 %v1555_v29, %v1385_v21 }
0x13e8   :  { %v1389_v34 = vsel %vm1388_vm11, %v1386_v33, 0.0 }
0x13e9   :  { %v1390_v35 = vadd.f32 %v1389_v34, %v1365_v18 }
0x13eb   :  { %1392 = vst [vmem:[#allocation1 + $0x18] sm:$0xff] %v1390_v35 }
0x13f2   :  { %v1395_v37 = vld [vmem:[#allocation1 + $0x1e] ss:$0 sm:$0xff] }
0x13f3   :  { %v1407_v38 = vmul.f32 %v1395_v37, %v1390_v35  ;;  %v1398_v40 = vmul.f32 %v1395_v37, %v1395_v37 }
0x13f5   :  { %1408 = vadd.xlane.f32.xlu0 %v1407_v38  ;;  %1399 = vadd.xlane.f32.xlu1 %v1398_v40 }
0x13f9   :  { %489 = vadd.xlane.f32.xlu0 %v488_v42 }
0x13fd   :  { %1222 = vadd.xlane.f32.xlu0 %v1221_v20 }
0x1482   :  { %v1409_v45 = vpop.xlane.xlu0 %1408  ;;  %v1400_v47 = vpop.xlane.xlu1 %1399 }
0x1483   :  { %v1401_v48 = vsub.f32 %v1397_v43, %v1400_v47  ;;  %v1410_v57 = vsub.f32 %v1784_v60, %v1409_v45 }
0x1485   :  { %1556 = vrsqrt.f32 %v1401_v48 }
0x1486   :  { %v490_v51 = vpop.xlane.xlu0 %489 }
0x1487   :  { %v491_v39 = vsub.f32 %v486_v50, %v490_v51 }
0x1489   :  { %v492_v54 = vmul.f32 %v1733_v32, %v491_v39 }
0x148a   :  { %v1223_v46 = vpop.xlane.xlu0 %1222 }
0x148b   :  { %v495_v55 = vsel %vm494_vm9, %v492_v54, 0.0  ;;  %v1224_v56 = vsub.f32 %v1777_v44, %v1223_v46 }
0x148c   :  { %v496_v4 = vadd.f32 %v495_v55, %v487_v28 }
0x148d   :  { %v1225_v36 = vmul.f32 %v1853_v12, %v1224_v56 }
0x148e   :  { %497 = vst [vmem:[#allocation1] sm:$0xff] %v496_v4  ;;  %1477 = vst [vmem:[%s1901_s1] sm:$0xff] %v496_v4 }
0x148f   :  { %v1557_v58 = vpop.eup %1556  ;;  %v1228_v32 = vsel %vm1227_vm13, %v1225_v36, 0.0 }
0x1490   :  { %v1411_v59 = vmul.f32 %v1557_v58, %v1410_v57  ;;  %v1229_v44 = vadd.f32 %v1228_v32, %v1844_v53 }
0x1492   :  { %v1414_v61 = vsel %vm1413_vm4, %v1411_v59, 0.0  ;;  %1231 = vst [vmem:[#allocation1 + $0x10] sm:$0xff] %v1229_v44  ;;  %1481 = vst [vmem:[%s1901_s1 + $0x10] sm:$0xff] %v1229_v44 }
0x1493   :  { %v1415_v12 = vadd.f32 %v1414_v61, %v1390_v35 }
0x1495   :  { %1417 = vst [vmem:[#allocation1 + $0x18] sm:$0xff] %v1415_v12 }
0x149c   :  { %v1420_v62 = vld [vmem:[#allocation1 + $0x1f] ss:$0 sm:$0xff] }
0x149d   :  { %v1423_v63 = vmul.f32 %v1420_v62, %v1420_v62  ;;  %v1432_v1 = vmul.f32 %v1420_v62, %v1415_v12 }
0x149f   :  { %1424 = vadd.xlane.f32.xlu1 %v1423_v63 }
0x14a3   :  { %907 = vadd.xlane.f32.xlu1 %v906_v0 }
0x14a7   :  { %1433 = vadd.xlane.f32.xlu1 %v1432_v1 }
0x152c   :  { %v1425_v6 = vpop.xlane.xlu1 %1424 }
0x152d   :  { %v1426_v53 = vsub.f32 %v1422_v2, %v1425_v6 }
0x152f   :  { %1558 = vrsqrt.f32 %v1426_v53 }
0x1530   :  { %v908_v8 = vpop.xlane.xlu1 %907 }
0x1531   :  { %v909_v9 = vsub.f32 %v903_v7, %v908_v8 }
0x1533   :  { %v910_v10 = vmul.f32 %v1809_v49, %v909_v9 }
0x1534   :  { %v1434_v11 = vpop.xlane.xlu1 %1433 }
0x1535   :  { %v913_v52 = vsel %vm912_vm1, %v910_v10, 0.0  ;;  %v1435_v22 = vsub.f32 %v1784_v60, %v1434_v11 }
0x1536   :  { %v914_v13 = vadd.f32 %v913_v52, %v1795_v27 }
0x1538   :  { %916 = vst [vmem:[#allocation1 + $0x8] sm:$0xff] %v914_v13  ;;  %1479 = vst [vmem:[%s1901_s1 + $0x8] sm:$0xff] %v914_v13 }
0x1539   :  { %v1559_v14 = vpop.eup %1558 }
0x153a   :  { %v1436_v15 = vmul.f32 %v1559_v14, %v1435_v22 }
0x153c   :  { %v1439_v5 = vsel %vm1438_vm15, %v1436_v15, 0.0 }
0x153d   :  { %v1440_v16 = vadd.f32 %v1439_v5, %v1415_v12 }
0x153f   :  { %1442 = vst [vmem:[#allocation1 + $0x18] sm:$0xff] %v1440_v16  ;;  %1483 = vst [vmem:[%s1901_s1 + $0x18] sm:$0xff] %v1440_v16 }

// kernel: custom-call.7
= control target key start
LH: loop header
LB: loop body
LE: loop exit
PB: predicated region body
PF: predicated region fallthrough
CT: control target
= control target key end

     0   :  { %v46_v0 = vlaneseq  ;;  %v730_v9 = vmov -1.0   ;;  %v731_v53 = vmov 0.0   ;;  %s884_s0 = inlined_call_operand.vmem [shape: f32[1,32,32], index: 0, kind: input, shape index: {}]   ;;  %s885_s1 = inlined_call_operand.vmem [shape: f32[1,32,32], index: 1, kind: output, shape index: {}]  }
   0x1   :  { %v35_v1 = vld [vmem:[%s884_s0] sm:$0xff]  ;;  %v37_v36 = vld [vmem:[%s884_s0 + $0x8] sm:$0xff] }
   0x2   :  { %v745_v2 = vand.u32 127, %v46_v0  ;;  %v747_v3 = vshrl.u32 %v46_v0, 7 }
   0x4   :  { %vm52_vm0 = vcmp.eq.s32.totalorder %v747_v3, %v745_v2  ;;  %vm48_vm1 = vcmp.lt.s32.totalorder %v745_v2, 32  ;;  %vm57_vm2 = vcmp.ge.s32.totalorder %v747_v3, %v745_v2  ;;  %vm119_vm4 = vcmp.eq.s32.totalorder %v745_v2, 0 }
   0x5   :  { %v54_v4 = vsel %vm52_vm0, %v35_v1, 0.0  ;;  %vm58_vm3 = vmand %vm57_vm2, %vm48_vm1  ;;  %vm116_vm5 = vcmp.eq.s32.totalorder %v745_v2, %v747_v3  ;;  %v120_v10 = vsel %vm119_vm4, 1.0, %v730_v9  ;;  %vm148_vm6 = vcmp.eq.s32.totalorder %v745_v2, 1 }
   0x6   :  { %55 = vadd.xlane.f32.xlu0 %v54_v4  ;;  %v59_v6 = vsel %vm58_vm3, %v35_v1, 0.0  ;;  %v121_v11 = vsel %vm116_vm5, %v120_v10, 0.0  ;;  %vm158_vm7 = vcmp.eq.s32.totalorder %v745_v2, 2  ;;  %vm168_vm8 = vcmp.eq.s32.totalorder %v745_v2, 3 }
   0x7   :  { %vm178_vm9 = vcmp.eq.s32.totalorder %v745_v2, 4  ;;  %v67_v31 = vadd.s32 8, %v747_v3  ;;  %vm188_vm11 = vcmp.eq.s32.totalorder %v745_v2, 5  ;;  %vm198_vm14 = vcmp.eq.s32.totalorder %v745_v2, 6 }
   0x8   :  { %vm208_vm0 = vcmp.eq.s32.totalorder %v745_v2, 7  ;;  %vm218_vm2 = vcmp.eq.s32.totalorder %v745_v2, 8  ;;  %vm232_vm3 = vcmp.eq.s32.totalorder %v745_v2, 9  ;;  %vm246_vm4 = vcmp.eq.s32.totalorder %v745_v2, 10 }
   0x9   :  { %vm68_vm10 = vcmp.eq.s32.totalorder %v67_v31, %v745_v2  ;;  %vm73_vm12 = vcmp.ge.s32.totalorder %v67_v31, %v745_v2  ;;  %vm127_vm15 = vcmp.eq.s32.totalorder %v745_v2, %v67_v31  ;;  %vm260_vm5 = vcmp.eq.s32.totalorder %v745_v2, 11 }
   0xa   :  { %v70_v37 = vsel %vm68_vm10, %v37_v36, 0.0  ;;  %vm74_vm13 = vmand %vm73_vm12, %vm48_vm1  ;;  %v128_v54 = vsel %vm127_vm15, -1.0, %v731_v53  ;;  %vm316_vm12 = vcmp.eq.s32.totalorder %v745_v2, 15  ;;  %vm348_vm15 = vcmp.eq.s32.totalorder %v745_v2, 17 }
   0xb   :  { %v75_v44 = vsel %vm74_vm13, %v37_v36, 0.0 }
  0x93   :  { %v751_v5 = vpop.xlane.xlu0 %55 }
  0x94   :  { %722 = vrcp.f32 %v751_v5 }
  0x9e   :  { %v759_v7 = vpop.eup %722 }
  0x9f   :  { %v61_v8 = vmul.f32 %v759_v7, %v59_v6 }
  0xa1   :  { %62 = vst [vmem:[#allocation2] sm:$0xff] %v61_v8 }
  0xa8   :  { %v144_v12 = vld [vmem:[#allocation2 + $0x1] ss:$0 sm:$0xff]  ;;  %v154_v15 = vld [vmem:[#allocation2 + $0x2] ss:$0 sm:$0xff]  ;;  %v164_v20 = vld [vmem:[#allocation2 + $0x3] ss:$0 sm:$0xff] }
  0xa9   :  { %v145_v13 = vxor.u32 2147483648, %v144_v12  ;;  %v155_v17 = vxor.u32 2147483648, %v154_v15  ;;  %v165_v22 = vxor.u32 2147483648, %v164_v20  ;;  %v174_v25 = vld [vmem:[#allocation2 + $0x4] ss:$0 sm:$0xff] }
  0xaa   :  { %v175_v27 = vxor.u32 2147483648, %v174_v25  ;;  %v184_v30 = vld [vmem:[#allocation2 + $0x5] ss:$0 sm:$0xff]  ;;  %v194_v38 = vld [vmem:[#allocation2 + $0x6] ss:$0 sm:$0xff] }
  0xab   :  { %v149_v14 = vmul.f32 %v145_v13, %v121_v11  ;;  %v185_v33 = vxor.u32 2147483648, %v184_v30  ;;  %v195_v40 = vxor.u32 2147483648, %v194_v38  ;;  %v204_v47 = vld [vmem:[#allocation2 + $0x7] ss:$0 sm:$0xff] }
  0xac   :  { %v205_v50 = vxor.u32 2147483648, %v204_v47  ;;  %v83_v47 = vadd.s32 16, %v747_v3 }
  0xad   :  { %150 = vadd.xlane.f32.xlu0 %v149_v14 }
  0xae   :  { %vm89_vm10 = vcmp.ge.s32.totalorder %v83_v47, %v745_v2  ;;  %vm134_vm13 = vcmp.eq.s32.totalorder %v745_v2, %v83_v47 }
 0x13a   :  { %v151_v16 = vpop.xlane.xlu0 %150 }
 0x13b   :  { %v152_v18 = vsel %vm148_vm6, %v151_v16, %v121_v11  ;;  %vm274_vm6 = vcmp.eq.s32.totalorder %v745_v2, 12 }
 0x13c   :  { %v159_v19 = vmul.f32 %v155_v17, %v152_v18 }
 0x13e   :  { %160 = vadd.xlane.f32.xlu1 %v159_v19 }
 0x1cb   :  { %v161_v21 = vpop.xlane.xlu1 %160 }
 0x1cc   :  { %v162_v23 = vsel %vm158_vm7, %v161_v21, %v152_v18  ;;  %vm288_vm7 = vcmp.eq.s32.totalorder %v745_v2, 13 }
 0x1cd   :  { %v169_v24 = vmul.f32 %v165_v22, %v162_v23 }
 0x1cf   :  { %170 = vadd.xlane.f32.xlu1 %v169_v24 }
 0x25c   :  { %v171_v26 = vpop.xlane.xlu1 %170 }
 0x25d   :  { %v172_v28 = vsel %vm168_vm8, %v171_v26, %v162_v23  ;;  %vm84_vm8 = vcmp.eq.s32.totalorder %v83_v47, %v745_v2 }
 0x25e   :  { %v179_v29 = vmul.f32 %v175_v27, %v172_v28 }
 0x260   :  { %180 = vadd.xlane.f32.xlu0 %v179_v29 }
 0x2ed   :  { %v181_v32 = vpop.xlane.xlu0 %180 }
 0x2ee   :  { %v182_v34 = vsel %vm178_vm9, %v181_v32, %v172_v28  ;;  %vm302_vm9 = vcmp.eq.s32.totalorder %v745_v2, 14 }
 0x2ef   :  { %v189_v35 = vmul.f32 %v185_v33, %v182_v34 }
 0x2f1   :  { %190 = vadd.xlane.f32.xlu1 %v189_v35 }
 0x2f5   :  { %71 = vadd.xlane.f32.xlu1 %v70_v37 }
 0x37e   :  { %v191_v39 = vpop.xlane.xlu1 %190 }
 0x37f   :  { %v192_v41 = vsel %vm188_vm11, %v191_v39, %v182_v34  ;;  %vm90_vm11 = vmand %vm89_vm10, %vm48_vm1  ;;  %vm474_vm10 = vcmp.eq.s32.totalorder %v745_v2, 24 }
 0x380   :  { %v199_v42 = vmul.f32 %v195_v40, %v192_v41 }
 0x382   :  { %200 = vadd.xlane.f32.xlu0 %v199_v42  ;;  %v775_v43 = vpop.xlane.xlu1 %71 }
 0x383   :  { %724 = vrcp.f32 %v775_v43 }
 0x38d   :  { %v781_v45 = vpop.eup %724 }
 0x38e   :  { %v77_v46 = vmul.f32 %v781_v45, %v75_v44 }
 0x390   :  { %78 = vst [vmem:[#allocation2 + $0x8] sm:$0xff] %v77_v46 }
 0x397   :  { %v214_v48 = vld [vmem:[#allocation2 + $0x8] ss:$0 sm:$0xff]  ;;  %v228_v59 = vld [vmem:[#allocation2 + $0x9] ss:$0 sm:$0xff]  ;;  %v242_v6 = vld [vmem:[#allocation2 + $0xa] ss:$0 sm:$0xff] }
 0x398   :  { %v215_v51 = vxor.u32 2147483648, %v214_v48  ;;  %v229_v62 = vxor.u32 2147483648, %v228_v59  ;;  %v243_v10 = vxor.u32 2147483648, %v242_v6  ;;  %v256_v15 = vld [vmem:[#allocation2 + $0xb] ss:$0 sm:$0xff] }
 0x399   :  { %v257_v18 = vxor.u32 2147483648, %v256_v15  ;;  %v270_v23 = vld [vmem:[#allocation2 + $0xc] ss:$0 sm:$0xff]  ;;  %v284_v31 = vld [vmem:[#allocation2 + $0xd] ss:$0 sm:$0xff] }
 0x39a   :  { %v223_v56 = vmul.f32 %v215_v51, %v128_v54  ;;  %v271_v26 = vxor.u32 2147483648, %v270_v23  ;;  %v285_v34 = vxor.u32 2147483648, %v284_v31  ;;  %v298_v39 = vld [vmem:[#allocation2 + $0xe] ss:$0 sm:$0xff] }
 0x39b   :  { %v299_v42 = vxor.u32 2147483648, %v298_v39 }
 0x40f   :  { %v201_v49 = vpop.xlane.xlu0 %200 }
 0x410   :  { %v202_v52 = vsel %vm198_vm14, %v201_v49, %v192_v41  ;;  %vm330_vm14 = vcmp.eq.s32.totalorder %v745_v2, 16 }
 0x411   :  { %v209_v55 = vmul.f32 %v205_v50, %v202_v52 }
 0x413   :  { %210 = vadd.xlane.f32.xlu0 %v209_v55  ;;  %v312_v55 = vld [vmem:[#allocation2 + $0xf] ss:$0 sm:$0xff] }
 0x417   :  { %224 = vadd.xlane.f32.xlu0 %v223_v56 }
 0x4a0   :  { %v211_v57 = vpop.xlane.xlu0 %210 }
 0x4a1   :  { %v212_v58 = vsel %vm208_vm0, %v211_v57, %v202_v52  ;;  %v313_v57 = vxor.u32 2147483648, %v312_v55  ;;  %vm366_vm0 = vcmp.eq.s32.totalorder %v745_v2, 18 }
 0x4a2   :  { %v219_v60 = vmul.f32 %v215_v51, %v212_v58  ;;  %v39_v51 = vld [vmem:[%s884_s0 + $0x10] sm:$0xff] }
 0x4a4   :  { %v225_v61 = vpop.xlane.xlu0 %224  ;;  %220 = vadd.xlane.f32.xlu1 %v219_v60 }
 0x4a5   :  { %v226_v63 = vsel %vm218_vm2, %v225_v61, %v128_v54  ;;  %v86_v54 = vsel %vm84_vm8, %v39_v51, 0.0 }
 0x4a6   :  { %v237_v0 = vmul.f32 %v229_v62, %v226_v63 }
 0x4a8   :  { %238 = vadd.xlane.f32.xlu0 %v237_v0 }
 0x531   :  { %v221_v1 = vpop.xlane.xlu1 %220 }
 0x532   :  { %v222_v4 = vsel %vm218_vm2, %v221_v1, %v212_v58  ;;  %vm384_vm2 = vcmp.eq.s32.totalorder %v745_v2, 19 }
 0x533   :  { %v233_v8 = vmul.f32 %v229_v62, %v222_v4 }
 0x535   :  { %v239_v9 = vpop.xlane.xlu0 %238  ;;  %234 = vadd.xlane.f32.xlu1 %v233_v8 }
 0x536   :  { %v240_v11 = vsel %vm232_vm3, %v239_v9, %v226_v63  ;;  %v91_v63 = vsel %vm90_vm11, %v39_v51, 0.0  ;;  %vm496_vm11 = vcmp.eq.s32.totalorder %v745_v2, 25 }
 0x537   :  { %v251_v12 = vmul.f32 %v243_v10, %v240_v11 }
 0x539   :  { %252 = vadd.xlane.f32.xlu0 %v251_v12 }
 0x5c2   :  { %v235_v13 = vpop.xlane.xlu1 %234 }
 0x5c3   :  { %v236_v14 = vsel %vm232_vm3, %v235_v13, %v222_v4  ;;  %vm402_vm3 = vcmp.eq.s32.totalorder %v745_v2, 20 }
 0x5c4   :  { %v247_v16 = vmul.f32 %v243_v10, %v236_v14 }
 0x5c6   :  { %v253_v17 = vpop.xlane.xlu0 %252  ;;  %248 = vadd.xlane.f32.xlu1 %v247_v16 }
 0x5c7   :  { %v254_v19 = vsel %vm246_vm4, %v253_v17, %v240_v11 }
 0x5c8   :  { %v265_v20 = vmul.f32 %v257_v18, %v254_v19 }
 0x5ca   :  { %266 = vadd.xlane.f32.xlu0 %v265_v20 }
 0x653   :  { %v249_v21 = vpop.xlane.xlu1 %248 }
 0x654   :  { %v250_v22 = vsel %vm246_vm4, %v249_v21, %v236_v14  ;;  %v135_v14 = vsel %vm134_vm13, -1.0, %v731_v53  ;;  %vm420_vm4 = vcmp.eq.s32.totalorder %v745_v2, 21  ;;  %vm540_vm13 = vcmp.eq.s32.totalorder %v745_v2, 27 }
 0x655   :  { %v261_v24 = vmul.f32 %v257_v18, %v250_v22 }
 0x657   :  { %v267_v25 = vpop.xlane.xlu0 %266  ;;  %262 = vadd.xlane.f32.xlu1 %v261_v24 }
 0x658   :  { %v268_v27 = vsel %vm260_vm5, %v267_v25, %v254_v19 }
 0x659   :  { %v279_v28 = vmul.f32 %v271_v26, %v268_v27 }
 0x65b   :  { %280 = vadd.xlane.f32.xlu0 %v279_v28 }
 0x6e4   :  { %v263_v29 = vpop.xlane.xlu1 %262 }
 0x6e5   :  { %v264_v30 = vsel %vm260_vm5, %v263_v29, %v250_v22 }
 0x6e6   :  { %v275_v32 = vmul.f32 %v271_v26, %v264_v30 }
 0x6e8   :  { %v281_v33 = vpop.xlane.xlu0 %280  ;;  %276 = vadd.xlane.f32.xlu1 %v275_v32 }
 0x6e9   :  { %v282_v35 = vsel %vm274_vm6, %v281_v33, %v268_v27 }
 0x6ea   :  { %v293_v36 = vmul.f32 %v285_v34, %v282_v35 }
 0x6ec   :  { %294 = vadd.xlane.f32.xlu0 %v293_v36 }
 0x775   :  { %v277_v37 = vpop.xlane.xlu1 %276 }
 0x776   :  { %v278_v38 = vsel %vm274_vm6, %v277_v37, %v264_v30  ;;  %vm438_vm6 = vcmp.eq.s32.totalorder %v745_v2, 22 }
 0x777   :  { %v289_v40 = vmul.f32 %v285_v34, %v278_v38 }
 0x779   :  { %v295_v41 = vpop.xlane.xlu0 %294  ;;  %290 = vadd.xlane.f32.xlu1 %v289_v40 }
 0x77a   :  { %v296_v44 = vsel %vm288_vm7, %v295_v41, %v282_v35 }
 0x77b   :  { %v307_v46 = vmul.f32 %v299_v42, %v296_v44 }
 0x77d   :  { %308 = vadd.xlane.f32.xlu0 %v307_v46 }
 0x806   :  { %v291_v48 = vpop.xlane.xlu1 %290 }
 0x807   :  { %v292_v49 = vsel %vm288_vm7, %v291_v48, %v278_v38 }
 0x808   :  { %v303_v50 = vmul.f32 %v299_v42, %v292_v49 }
 0x80a   :  { %v309_v52 = vpop.xlane.xlu0 %308  ;;  %304 = vadd.xlane.f32.xlu1 %v303_v50 }
 0x80b   :  { %v310_v56 = vsel %vm302_vm9, %v309_v52, %v296_v44 }
 0x80c   :  { %v321_v58 = vmul.f32 %v313_v57, %v310_v56 }
 0x80e   :  { %87 = vadd.xlane.f32.xlu1 %v86_v54 }
 0x812   :  { %322 = vadd.xlane.f32.xlu1 %v321_v58 }
 0x897   :  { %v305_v59 = vpop.xlane.xlu1 %304 }
 0x898   :  { %v306_v60 = vsel %vm302_vm9, %v305_v59, %v292_v49 }
 0x899   :  { %v317_v61 = vmul.f32 %v313_v57, %v306_v60 }
 0x89b   :  { %318 = vadd.xlane.f32.xlu0 %v317_v61  ;;  %v800_v62 = vpop.xlane.xlu1 %87 }
 0x89c   :  { %726 = vrcp.f32 %v800_v62 }
 0x89f   :  { %v323_v4 = vpop.xlane.xlu1 %322 }
 0x8a0   :  { %v324_v9 = vsel %vm316_vm12, %v323_v4, %v310_v56 }
 0x8a6   :  { %v806_v0 = vpop.eup %726 }
 0x8a7   :  { %v93_v1 = vmul.f32 %v806_v0, %v91_v63 }
 0x8a9   :  { %94 = vst [vmem:[#allocation2 + $0x10] sm:$0xff] %v93_v1 }
 0x8b0   :  { %v326_v6 = vld [vmem:[#allocation2 + $0x10] ss:$0 sm:$0xff]  ;;  %v344_v16 = vld [vmem:[#allocation2 + $0x11] ss:$0 sm:$0xff]  ;;  %v362_v27 = vld [vmem:[#allocation2 + $0x12] ss:$0 sm:$0xff] }
 0x8b1   :  { %v327_v8 = vxor.u32 2147483648, %v326_v6  ;;  %v345_v18 = vxor.u32 2147483648, %v344_v16  ;;  %v363_v29 = vxor.u32 2147483648, %v362_v27  ;;  %v380_v38 = vld [vmem:[#allocation2 + $0x13] ss:$0 sm:$0xff] }
 0x8b2   :  { %v381_v40 = vxor.u32 2147483648, %v380_v38  ;;  %v398_v51 = vld [vmem:[#allocation2 + $0x14] ss:$0 sm:$0xff]  ;;  %v416_v1 = vld [vmem:[#allocation2 + $0x15] ss:$0 sm:$0xff] }
 0x8b3   :  { %v335_v10 = vmul.f32 %v327_v8, %v324_v9  ;;  %v339_v15 = vmul.f32 %v327_v8, %v135_v14  ;;  %v399_v54 = vxor.u32 2147483648, %v398_v51  ;;  %v417_v6 = vxor.u32 2147483648, %v416_v1  ;;  %v434_v16 = vld [vmem:[#allocation2 + $0x16] ss:$0 sm:$0xff] }
 0x8b5   :  { %336 = vadd.xlane.f32.xlu1 %v335_v10 }
 0x928   :  { %v319_v11 = vpop.xlane.xlu0 %318 }
 0x929   :  { %v320_v12 = vsel %vm316_vm12, %v319_v11, %v306_v60  ;;  %vm518_vm12 = vcmp.eq.s32.totalorder %v745_v2, 26 }
 0x92a   :  { %v331_v13 = vmul.f32 %v327_v8, %v320_v12 }
 0x92c   :  { %332 = vadd.xlane.f32.xlu0 %v331_v13 }
 0x930   :  { %340 = vadd.xlane.f32.xlu0 %v339_v15 }
 0x942   :  { %v337_v17 = vpop.xlane.xlu1 %336 }
 0x943   :  { %v338_v19 = vsel %vm330_vm14, %v337_v17, %v324_v9  ;;  %v99_v17 = vadd.s32 24, %v747_v3 }
 0x944   :  { %v353_v20 = vmul.f32 %v345_v18, %v338_v19 }
 0x945   :  { %vm100_vm5 = vcmp.eq.s32.totalorder %v99_v17, %v745_v2  ;;  %vm105_vm7 = vcmp.ge.s32.totalorder %v99_v17, %v745_v2  ;;  %vm141_vm9 = vcmp.eq.s32.totalorder %v745_v2, %v99_v17 }
 0x946   :  { %354 = vadd.xlane.f32.xlu0 %v353_v20  ;;  %vm106_vm8 = vmand %vm105_vm7, %vm48_vm1  ;;  %vm456_vm1 = vcmp.eq.s32.totalorder %v745_v2, 23 }
 0x9b9   :  { %v333_v21 = vpop.xlane.xlu0 %332 }
 0x9ba   :  { %v334_v22 = vsel %vm330_vm14, %v333_v21, %v320_v12 }
 0x9bb   :  { %v349_v23 = vmul.f32 %v345_v18, %v334_v22 }
 0x9bd   :  { %v341_v24 = vpop.xlane.xlu0 %340  ;;  %350 = vadd.xlane.f32.xlu1 %v349_v23 }
 0x9be   :  { %v342_v25 = vsel %vm330_vm14, %v341_v24, %v135_v14  ;;  %vm562_vm14 = vcmp.eq.s32.totalorder %v745_v2, 28 }
 0x9bf   :  { %v357_v26 = vmul.f32 %v345_v18, %v342_v25 }
 0x9c1   :  { %358 = vadd.xlane.f32.xlu1 %v357_v26 }
 0x9d3   :  { %v355_v28 = vpop.xlane.xlu0 %354 }
 0x9d4   :  { %v356_v30 = vsel %vm348_vm15, %v355_v28, %v338_v19  ;;  %v435_v19 = vxor.u32 2147483648, %v434_v16 }
 0x9d5   :  { %v371_v31 = vmul.f32 %v363_v29, %v356_v30 }
 0x9d7   :  { %372 = vadd.xlane.f32.xlu1 %v371_v31 }
 0xa4a   :  { %v351_v32 = vpop.xlane.xlu1 %350 }
 0xa4b   :  { %v352_v33 = vsel %vm348_vm15, %v351_v32, %v334_v22  ;;  %v41_v22 = vld [vmem:[%s884_s0 + $0x18] sm:$0xff] }
 0xa4c   :  { %v367_v34 = vmul.f32 %v363_v29, %v352_v33  ;;  %v102_v23 = vsel %vm100_vm5, %v41_v22, 0.0  ;;  %vm647_vm5 = vweird.f32 %v751_v5 }
 0xa4e   :  { %368 = vadd.xlane.f32.xlu0 %v367_v34  ;;  %v359_v35 = vpop.xlane.xlu1 %358 }
 0xa4f   :  { %v360_v36 = vsel %vm348_vm15, %v359_v35, %v342_v25  ;;  %v107_v35 = vsel %vm106_vm8, %v41_v22, 0.0  ;;  %vm584_vm15 = vcmp.eq.s32.totalorder %v745_v2, 29 }
 0xa50   :  { %v375_v37 = vmul.f32 %v363_v29, %v360_v36  ;;  %v452_v29 = vld [vmem:[#allocation2 + $0x17] ss:$0 sm:$0xff] }
 0xa51   :  { %v453_v31 = vxor.u32 2147483648, %v452_v29 }
 0xa52   :  { %376 = vadd.xlane.f32.xlu0 %v375_v37 }
 0xa64   :  { %v373_v39 = vpop.xlane.xlu1 %372 }
 0xa65   :  { %v374_v41 = vsel %vm366_vm0, %v373_v39, %v356_v30 }
 0xa66   :  { %v389_v42 = vmul.f32 %v381_v40, %v374_v41 }
 0xa68   :  { %390 = vadd.xlane.f32.xlu0 %v389_v42 }
 0xadb   :  { %v369_v44 = vpop.xlane.xlu0 %368 }
 0xadc   :  { %v370_v46 = vsel %vm366_vm0, %v369_v44, %v352_v33 }
 0xadd   :  { %v385_v47 = vmul.f32 %v381_v40, %v370_v46 }
 0xadf   :  { %386 = vadd.xlane.f32.xlu1 %v385_v47  ;;  %v377_v48 = vpop.xlane.xlu0 %376 }
 0xae0   :  { %v378_v49 = vsel %vm366_vm0, %v377_v48, %v360_v36  ;;  %vm606_vm0 = vcmp.eq.s32.totalorder %v745_v2, 30 }
 0xae1   :  { %v393_v50 = vmul.f32 %v381_v40, %v378_v49 }
 0xae3   :  { %394 = vadd.xlane.f32.xlu1 %v393_v50  ;;  %v142_v50 = vsel %vm141_vm9, -1.0, %v731_v53 }
 0xaf5   :  { %v391_v52 = vpop.xlane.xlu0 %390 }
 0xaf6   :  { %v392_v55 = vsel %vm384_vm2, %v391_v52, %v374_v41 }
 0xaf7   :  { %v407_v56 = vmul.f32 %v399_v54, %v392_v55 }
 0xaf9   :  { %408 = vadd.xlane.f32.xlu1 %v407_v56 }
 0xb6c   :  { %v387_v57 = vpop.xlane.xlu1 %386 }
 0xb6d   :  { %v388_v58 = vsel %vm384_vm2, %v387_v57, %v370_v46 }
 0xb6e   :  { %v403_v59 = vmul.f32 %v399_v54, %v388_v58 }
 0xb70   :  { %404 = vadd.xlane.f32.xlu0 %v403_v59  ;;  %v395_v60 = vpop.xlane.xlu1 %394 }
 0xb71   :  { %v396_v61 = vsel %vm384_vm2, %v395_v60, %v378_v49  ;;  %vm628_vm2 = vcmp.eq.s32.totalorder %v745_v2, 31 }
 0xb72   :  { %v411_v63 = vmul.f32 %v399_v54, %v396_v61 }
 0xb74   :  { %412 = vadd.xlane.f32.xlu0 %v411_v63 }
 0xb86   :  { %v409_v4 = vpop.xlane.xlu1 %408 }
 0xb87   :  { %v410_v8 = vsel %vm402_vm3, %v409_v4, %v392_v55 }
 0xb88   :  { %v425_v9 = vmul.f32 %v417_v6, %v410_v8 }
 0xb8a   :  { %426 = vadd.xlane.f32.xlu0 %v425_v9 }
 0xbfd   :  { %v405_v10 = vpop.xlane.xlu0 %404 }
 0xbfe   :  { %v406_v11 = vsel %vm402_vm3, %v405_v10, %v388_v58 }
 0xbff   :  { %v421_v12 = vmul.f32 %v417_v6, %v406_v11 }
 0xc01   :  { %422 = vadd.xlane.f32.xlu1 %v421_v12  ;;  %v413_v13 = vpop.xlane.xlu0 %412 }
 0xc02   :  { %v414_v14 = vsel %vm402_vm3, %v413_v13, %v396_v61  ;;  %vm652_vm3 = vweird.f32 %v775_v43 }
 0xc03   :  { %v429_v15 = vmul.f32 %v417_v6, %v414_v14 }
 0xc05   :  { %430 = vadd.xlane.f32.xlu1 %v429_v15 }
 0xc17   :  { %v427_v18 = vpop.xlane.xlu0 %426 }
 0xc18   :  { %v428_v20 = vsel %vm420_vm4, %v427_v18, %v410_v8 }
 0xc19   :  { %v443_v21 = vmul.f32 %v435_v19, %v428_v20 }
 0xc1b   :  { %444 = vadd.xlane.f32.xlu1 %v443_v21 }
 0xc1f   :  { %103 = vadd.xlane.f32.xlu1 %v102_v23 }
 0xc8e   :  { %v423_v24 = vpop.xlane.xlu1 %422 }
 0xc8f   :  { %v424_v25 = vsel %vm420_vm4, %v423_v24, %v406_v11 }
 0xc90   :  { %v439_v3 = vmul.f32 %v435_v19, %v424_v25 }
 0xc92   :  { %440 = vadd.xlane.f32.xlu0 %v439_v3  ;;  %v431_v26 = vpop.xlane.xlu1 %430 }
 0xc93   :  { %v432_v27 = vsel %vm420_vm4, %v431_v26, %v414_v14 }
 0xc94   :  { %v447_v28 = vmul.f32 %v435_v19, %v432_v27 }
 0xc96   :  { %448 = vadd.xlane.f32.xlu0 %v447_v28 }
 0xca8   :  { %v445_v30 = vpop.xlane.xlu1 %444 }
 0xca9   :  { %v446_v32 = vsel %vm438_vm6, %v445_v30, %v428_v20 }
 0xcaa   :  { %v461_v33 = vmul.f32 %v453_v31, %v446_v32 }
 0xcac   :  { %462 = vadd.xlane.f32.xlu1 %v461_v33  ;;  %v832_v34 = vpop.xlane.xlu1 %103 }
 0xcad   :  { %728 = vrcp.f32 %v832_v34  ;;  %vm664_vm4 = vweird.f32 %v832_v34 }
 0xcb7   :  { %v838_v36 = vpop.eup %728 }
 0xcb8   :  { %v109_v37 = vmul.f32 %v838_v36, %v107_v35 }
 0xcba   :  { %110 = vst [vmem:[#allocation2 + $0x18] sm:$0xff] %v109_v37 }
 0xcc1   :  { %v470_v46 = vld [vmem:[#allocation2 + $0x18] ss:$0 sm:$0xff]  ;;  %v492_v60 = vld [vmem:[#allocation2 + $0x19] ss:$0 sm:$0xff]  ;;  %v514_v15 = vld [vmem:[#allocation2 + $0x1a] ss:$0 sm:$0xff] }
 0xcc2   :  { %v471_v47 = vxor.u32 2147483648, %v470_v46  ;;  %v493_v63 = vxor.u32 2147483648, %v492_v60  ;;  %v515_v17 = vxor.u32 2147483648, %v514_v15  ;;  %v536_v28 = vld [vmem:[#allocation2 + $0x1b] ss:$0 sm:$0xff] }
 0xcc3   :  { %v537_v30 = vxor.u32 2147483648, %v536_v28  ;;  %v558_v46 = vld [vmem:[#allocation2 + $0x1c] ss:$0 sm:$0xff] }
 0xcc4   :  { %v487_v52 = vmul.f32 %v471_v47, %v142_v50 }
 0xd1f   :  { %v441_v38 = vpop.xlane.xlu0 %440 }
 0xd20   :  { %v442_v39 = vsel %vm438_vm6, %v441_v38, %v424_v25 }
 0xd21   :  { %v457_v40 = vmul.f32 %v453_v31, %v442_v39 }
 0xd23   :  { %458 = vadd.xlane.f32.xlu0 %v457_v40  ;;  %v449_v41 = vpop.xlane.xlu0 %448 }
 0xd24   :  { %v450_v42 = vsel %vm438_vm6, %v449_v41, %v432_v27  ;;  %vm658_vm6 = vweird.f32 %v800_v62 }
 0xd25   :  { %v465_v44 = vmul.f32 %v453_v31, %v450_v42 }
 0xd27   :  { %466 = vadd.xlane.f32.xlu0 %v465_v44 }
 0xd39   :  { %v463_v48 = vpop.xlane.xlu1 %462 }
 0xd3a   :  { %v464_v49 = vsel %vm456_vm1, %v463_v48, %v446_v32  ;;  %v559_v48 = vxor.u32 2147483648, %v558_v46 }
 0xd3b   :  { %v479_v51 = vmul.f32 %v471_v47, %v464_v49 }
 0xd3d   :  { %480 = vadd.xlane.f32.xlu0 %v479_v51 }
 0xd41   :  { %488 = vadd.xlane.f32.xlu0 %v487_v52 }
 0xdb0   :  { %v459_v54 = vpop.xlane.xlu0 %458 }
 0xdb1   :  { %v460_v55 = vsel %vm456_vm1, %v459_v54, %v442_v39 }
 0xdb2   :  { %v475_v56 = vmul.f32 %v471_v47, %v460_v55 }
 0xdb4   :  { %v467_v57 = vpop.xlane.xlu0 %466  ;;  %476 = vadd.xlane.f32.xlu1 %v475_v56 }
 0xdb5   :  { %v468_v58 = vsel %vm456_vm1, %v467_v57, %v450_v42 }
 0xdb6   :  { %v483_v59 = vmul.f32 %v471_v47, %v468_v58 }
 0xdb8   :  { %484 = vadd.xlane.f32.xlu1 %v483_v59 }
 0xdca   :  { %v481_v61 = vpop.xlane.xlu0 %480 }
 0xdcb   :  { %v482_v1 = vsel %vm474_vm10, %v481_v61, %v464_v49  ;;  %v580_v61 = vld [vmem:[#allocation2 + $0x1d] ss:$0 sm:$0xff] }
 0xdcc   :  { %v501_v4 = vmul.f32 %v493_v63, %v482_v1 }
 0xdce   :  { %502 = vadd.xlane.f32.xlu0 %v501_v4  ;;  %v489_v53 = vpop.xlane.xlu0 %488 }
 0xdcf   :  { %v490_v6 = vsel %vm474_vm10, %v489_v53, %v142_v50 }
 0xdd0   :  { %v509_v8 = vmul.f32 %v493_v63, %v490_v6 }
 0xdd2   :  { %510 = vadd.xlane.f32.xlu0 %v509_v8 }
 0xe41   :  { %v477_v9 = vpop.xlane.xlu1 %476 }
 0xe42   :  { %v478_v10 = vsel %vm474_vm10, %v477_v9, %v460_v55 }
 0xe43   :  { %v497_v11 = vmul.f32 %v493_v63, %v478_v10 }
 0xe45   :  { %498 = vadd.xlane.f32.xlu1 %v497_v11  ;;  %v485_v12 = vpop.xlane.xlu1 %484 }
 0xe46   :  { %v486_v13 = vsel %vm474_vm10, %v485_v12, %v468_v58 }
 0xe47   :  { %v505_v14 = vmul.f32 %v493_v63, %v486_v13 }
 0xe49   :  { %506 = vadd.xlane.f32.xlu1 %v505_v14 }
 0xe5b   :  { %v503_v16 = vpop.xlane.xlu0 %502 }
 0xe5c   :  { %v504_v18 = vsel %vm496_vm11, %v503_v16, %v482_v1  ;;  %v581_v1 = vxor.u32 2147483648, %v580_v61  ;;  %v602_v16 = vld [vmem:[#allocation2 + $0x1e] ss:$0 sm:$0xff] }
 0xe5d   :  { %v523_v19 = vmul.f32 %v515_v17, %v504_v18 }
 0xe5f   :  { %524 = vadd.xlane.f32.xlu0 %v523_v19  ;;  %v511_v20 = vpop.xlane.xlu0 %510 }
 0xe60   :  { %v512_v21 = vsel %vm496_vm11, %v511_v20, %v490_v6 }
 0xe61   :  { %v531_v22 = vmul.f32 %v515_v17, %v512_v21 }
 0xe63   :  { %532 = vadd.xlane.f32.xlu0 %v531_v22 }
 0xed2   :  { %v499_v23 = vpop.xlane.xlu1 %498 }
 0xed3   :  { %v500_v24 = vsel %vm496_vm11, %v499_v23, %v478_v10 }
 0xed4   :  { %v519_v25 = vmul.f32 %v515_v17, %v500_v24 }
 0xed6   :  { %520 = vadd.xlane.f32.xlu1 %v519_v25  ;;  %v507_v3 = vpop.xlane.xlu1 %506 }
 0xed7   :  { %v508_v26 = vsel %vm496_vm11, %v507_v3, %v486_v13 }
 0xed8   :  { %v527_v27 = vmul.f32 %v515_v17, %v508_v26 }
 0xeda   :  { %528 = vadd.xlane.f32.xlu1 %v527_v27 }
 0xeec   :  { %v525_v29 = vpop.xlane.xlu0 %524 }
 0xeed   :  { %v526_v31 = vsel %vm518_vm12, %v525_v29, %v504_v18  ;;  %v603_v18 = vxor.u32 2147483648, %v602_v16  ;;  %v624_v29 = vld [vmem:[#allocation2 + $0x1f] ss:$0 sm:$0xff] }
 0xeee   :  { %v545_v32 = vmul.f32 %v537_v30, %v526_v31 }
 0xef0   :  { %546 = vadd.xlane.f32.xlu0 %v545_v32  ;;  %v533_v33 = vpop.xlane.xlu0 %532 }
 0xef1   :  { %v534_v35 = vsel %vm518_vm12, %v533_v33, %v512_v21 }
 0xef2   :  { %v553_v37 = vmul.f32 %v537_v30, %v534_v35 }
 0xef4   :  { %554 = vadd.xlane.f32.xlu0 %v553_v37 }
 0xf63   :  { %v521_v38 = vpop.xlane.xlu1 %520 }
 0xf64   :  { %v522_v39 = vsel %vm518_vm12, %v521_v38, %v500_v24 }
 0xf65   :  { %v541_v40 = vmul.f32 %v537_v30, %v522_v39 }
 0xf67   :  { %542 = vadd.xlane.f32.xlu1 %v541_v40  ;;  %v529_v41 = vpop.xlane.xlu1 %528 }
 0xf68   :  { %v530_v42 = vsel %vm518_vm12, %v529_v41, %v508_v26 }
 0xf69   :  { %v549_v44 = vmul.f32 %v537_v30, %v530_v42 }
 0xf6b   :  { %550 = vadd.xlane.f32.xlu1 %v549_v44 }
 0xf7d   :  { %v547_v47 = vpop.xlane.xlu0 %546 }
 0xf7e   :  { %v548_v49 = vsel %vm540_vm13, %v547_v47, %v526_v31  ;;  %v625_v31 = vxor.u32 2147483648, %v624_v29 }
 0xf7f   :  { %v567_v50 = vmul.f32 %v559_v48, %v548_v49 }
 0xf81   :  { %568 = vadd.xlane.f32.xlu0 %v567_v50  ;;  %v555_v51 = vpop.xlane.xlu0 %554 }
 0xf82   :  { %v556_v52 = vsel %vm540_vm13, %v555_v51, %v534_v35 }
 0xf83   :  { %v575_v54 = vmul.f32 %v559_v48, %v556_v52 }
 0xf85   :  { %576 = vadd.xlane.f32.xlu0 %v575_v54 }
 0xff4   :  { %v543_v55 = vpop.xlane.xlu1 %542 }
 0xff5   :  { %v544_v56 = vsel %vm540_vm13, %v543_v55, %v522_v39 }
 0xff6   :  { %v563_v57 = vmul.f32 %v559_v48, %v544_v56 }
 0xff8   :  { %564 = vadd.xlane.f32.xlu1 %v563_v57  ;;  %v551_v58 = vpop.xlane.xlu1 %550 }
 0xff9   :  { %v552_v59 = vsel %vm540_vm13, %v551_v58, %v530_v42 }
 0xffa   :  { %v571_v60 = vmul.f32 %v559_v48, %v552_v59 }
 0xffc   :  { %572 = vadd.xlane.f32.xlu1 %v571_v60 }
0x100e   :  { %v569_v63 = vpop.xlane.xlu0 %568 }
0x100f   :  { %v570_v4 = vsel %vm562_vm14, %v569_v63, %v548_v49 }
0x1010   :  { %v589_v53 = vmul.f32 %v581_v1, %v570_v4 }
0x1012   :  { %590 = vadd.xlane.f32.xlu0 %v589_v53  ;;  %v577_v6 = vpop.xlane.xlu0 %576 }
0x1013   :  { %v578_v8 = vsel %vm562_vm14, %v577_v6, %v556_v52 }
0x1014   :  { %v597_v9 = vmul.f32 %v581_v1, %v578_v8 }
0x1016   :  { %598 = vadd.xlane.f32.xlu0 %v597_v9 }
0x1085   :  { %v565_v10 = vpop.xlane.xlu1 %564 }
0x1086   :  { %v566_v11 = vsel %vm562_vm14, %v565_v10, %v544_v56 }
0x1087   :  { %v585_v12 = vmul.f32 %v581_v1, %v566_v11 }
0x1089   :  { %586 = vadd.xlane.f32.xlu1 %v585_v12  ;;  %v573_v13 = vpop.xlane.xlu1 %572 }
0x108a   :  { %v574_v14 = vsel %vm562_vm14, %v573_v13, %v552_v59 }
0x108b   :  { %v593_v15 = vmul.f32 %v581_v1, %v574_v14 }
0x108d   :  { %594 = vadd.xlane.f32.xlu1 %v593_v15 }
0x109f   :  { %v591_v17 = vpop.xlane.xlu0 %590 }
0x10a0   :  { %v592_v19 = vsel %vm584_vm15, %v591_v17, %v570_v4 }
0x10a1   :  { %v611_v20 = vmul.f32 %v603_v18, %v592_v19 }
0x10a3   :  { %612 = vadd.xlane.f32.xlu0 %v611_v20  ;;  %v599_v21 = vpop.xlane.xlu0 %598 }
0x10a4   :  { %v600_v22 = vsel %vm584_vm15, %v599_v21, %v578_v8 }
0x10a5   :  { %v619_v23 = vmul.f32 %v603_v18, %v600_v22 }
0x10a7   :  { %620 = vadd.xlane.f32.xlu0 %v619_v23 }
0x1116   :  { %v587_v24 = vpop.xlane.xlu1 %586 }
0x1117   :  { %v588_v25 = vsel %vm584_vm15, %v587_v24, %v566_v11 }
0x1118   :  { %v607_v3 = vmul.f32 %v603_v18, %v588_v25 }
0x111a   :  { %608 = vadd.xlane.f32.xlu1 %v607_v3  ;;  %v595_v26 = vpop.xlane.xlu1 %594 }
0x111b   :  { %v596_v27 = vsel %vm584_vm15, %v595_v26, %v574_v14 }
0x111c   :  { %v615_v28 = vmul.f32 %v603_v18, %v596_v27 }
0x111e   :  { %616 = vadd.xlane.f32.xlu1 %v615_v28 }
0x1130   :  { %v613_v30 = vpop.xlane.xlu0 %612 }
0x1131   :  { %v614_v32 = vsel %vm606_vm0, %v613_v30, %v592_v19 }
0x1132   :  { %v633_v33 = vmul.f32 %v625_v31, %v614_v32 }
0x1134   :  { %634 = vadd.xlane.f32.xlu0 %v633_v33  ;;  %v621_v35 = vpop.xlane.xlu0 %620 }
0x1135   :  { %v622_v37 = vsel %vm606_vm0, %v621_v35, %v600_v22 }
0x1136   :  { %v641_v38 = vmul.f32 %v625_v31, %v622_v37 }
0x1138   :  { %642 = vadd.xlane.f32.xlu0 %v641_v38 }
0x11a7   :  { %v609_v39 = vpop.xlane.xlu1 %608 }
0x11a8   :  { %v610_v40 = vsel %vm606_vm0, %v609_v39, %v588_v25 }
0x11a9   :  { %v629_v41 = vmul.f32 %v625_v31, %v610_v40 }
0x11ab   :  { %630 = vadd.xlane.f32.xlu1 %v629_v41  ;;  %v617_v42 = vpop.xlane.xlu1 %616 }
0x11ac   :  { %v618_v44 = vsel %vm606_vm0, %v617_v42, %v596_v27 }
0x11ad   :  { %v637_v46 = vmul.f32 %v625_v31, %v618_v44 }
0x11af   :  { %638 = vadd.xlane.f32.xlu1 %v637_v46 }
0x11c1   :  { %v635_v47 = vpop.xlane.xlu0 %634 }
0x11c2   :  { %v636_v48 = vsel %vm628_vm2, %v635_v47, %v614_v32 }
0x11c3   :  { %v651_v49 = vmul.f32 %v781_v45, %v636_v48 }
0x11c5   :  { %v653_v50 = vsel %vm652_vm3, %v636_v48, %v651_v49  ;;  %v643_v51 = vpop.xlane.xlu0 %642 }
0x11c6   :  { %704 = vst [vmem:[%s885_s1 + $0x8] sm:$0xff] %v653_v50  ;;  %v644_v52 = vsel %vm628_vm2, %v643_v51, %v622_v37 }
0x11c7   :  { %v663_v54 = vmul.f32 %v838_v36, %v644_v52 }
0x11c9   :  { %v665_v55 = vsel %vm664_vm4, %v644_v52, %v663_v54 }
0x11ca   :  { %708 = vst [vmem:[%s885_s1 + $0x18] sm:$0xff] %v665_v55 }
0x1238   :  { %v631_v45 = vpop.xlane.xlu1 %630 }
0x1239   :  { %v632_v43 = vsel %vm628_vm2, %v631_v45, %v610_v40 }
0x123a   :  { %v646_v56 = vmul.f32 %v759_v7, %v632_v43 }
0x123c   :  { %v648_v57 = vsel %vm647_vm5, %v632_v43, %v646_v56  ;;  %v639_v58 = vpop.xlane.xlu1 %638 }
0x123d   :  { %702 = vst [vmem:[%s885_s1] sm:$0xff] %v648_v57  ;;  %v640_v34 = vsel %vm628_vm2, %v639_v58, %v618_v44 }
0x123e   :  { %v657_v36 = vmul.f32 %v806_v0, %v640_v34 }
0x1240   :  { %v659_v59 = vsel %vm658_vm6, %v640_v34, %v657_v36 }
0x1241   :  { %706 = vst [vmem:[%s885_s1 + $0x10] sm:$0xff] %v659_v59 }

// kernel: _lambda_.1
= control target key start
LH: loop header
LB: loop body
LE: loop exit
PB: predicated region body
PF: predicated region fallthrough
CT: control target
= control target key end

     0   :  { %12 = vsyncpa [#allocation3], 0  ;;  %s757_s0 = inlined_call_operand.hbm [shape: f32[128,128], index: 0, kind: input, shape index: {}]   ;;  %s758_s1 = inlined_call_operand.hbm [shape: f32[128,128], index: 1, kind: input, shape index: {}]   ;;  %s759_s2 = inlined_call_operand.vmem [shape: f32[1,128], index: 2, kind: input, shape index: {}]   ;;  %s760_s3 = inlined_call_operand.vmem [shape: f32[1,128], index: 3, kind: input, shape index: {}]   ;;  %s761_s4 = inlined_call_operand.vmem [shape: f32[8,128], index: 4, kind: input, shape index: {}]   ;;  %s762_s5 = inlined_call_operand.vmem [shape: f32[128,128], index: 5, kind: output, shape index: {0}]   ;;  %s763_s6 = inlined_call_operand.vmem [shape: f32[8,128], index: 6, kind: output, shape index: {1}]  }
   0x1   :  { %13 = vsyncpa [#allocation5], 0  ;;  %s631_s21 = smov [#allocation2]   ;;  %s583_s25 = scalar_lea.hbm %s757_s0, 2048 }
   0x2   :  { %s19_s22 = sshll.u32 %s631_s21, 4  ;;  %p584_p0 = scmp.ne.s32.totalorder %s757_s0, %s583_s25  ;;  %s20_s22 = int_to_ptr.vmem [resolvable:$true] %s19_s22 }
   0x3   :  { %p587_p1 = scmp.lt.u32.totalorder %s583_s25, %s757_s0 }
   0x5   :  { %p589_p2 = pnand %p587_p1, %p584_p0 }
   0x7   :  { %592 = shalt.err (!%p589_p2)
}
   0x8   :  { %s593_s30 = scalar_lea.vmem %s20_s22, 2048  ;;  %p598_p4 = scmp.lt.s32.totalorder %s20_s22, %s20_s22 }
   0x9   :  { %p594_p3 = scmp.ne.s32.totalorder %s20_s22, %s593_s30  ;;  %p599_p5 = scmp.lt.s32.totalorder %s593_s30, %s593_s30 }
   0xb   :  { %p600_p6 = por %p599_p5, %p598_p4 }
   0xd   :  { %p601_p7 = pnand %p600_p6, %p594_p3 }
   0xf   :  { %604 = shalt.err (!%p601_p7)
}
  0x10   :  { %s632_s7 = smov 128   ;;  %s633_s8 = smov 8  }
  0x11   :  { %25 = dma.hbm_to_vmem [thread:$0]  %s757_s0, 2048, %s20_s22, [#allocation3], %s632_s7, %s632_s7, %s633_s8  }
  0x12   :  { %s634_s11 = smov [#allocation4]   ;;  %s605_s15 = scalar_lea.hbm %s758_s1, 2048 }
  0x13   :  { %s31_s12 = sshll.u32 %s634_s11, 4  ;;  %p606_p8 = scmp.ne.s32.totalorder %s758_s1, %s605_s15  ;;  %s32_s12 = int_to_ptr.vmem [resolvable:$true] %s31_s12 }
  0x14   :  { %p609_p9 = scmp.lt.u32.totalorder %s605_s15, %s758_s1 }
  0x16   :  { %p611_p10 = pnand %p609_p9, %p606_p8 }
  0x18   :  { %614 = shalt.err (!%p611_p10)
}
  0x19   :  { %s615_s20 = scalar_lea.vmem %s32_s12, 2048  ;;  %p620_p12 = scmp.lt.s32.totalorder %s32_s12, %s32_s12 }
  0x1a   :  { %p616_p11 = scmp.ne.s32.totalorder %s32_s12, %s615_s20  ;;  %p621_p13 = scmp.lt.s32.totalorder %s615_s20, %s615_s20 }
  0x1c   :  { %p622_p0 = por %p621_p13, %p620_p12 }
  0x1e   :  { %p623_p1 = pnand %p622_p0, %p616_p11 }
  0x20   :  { %626 = shalt.err (!%p623_p1)
}
  0x21   :  { %37 = dma.hbm_to_vmem [thread:$0]  %s758_s1, 2048, %s32_s12, [#allocation5], %s632_s7, %s632_s7, %s633_s8  }
  0x22   :  { %627 = dma.done.wait [#allocation3], 2048  }
  0x23   :  { %628 = vsyncadd [#allocation3], 4294965248 }
  0x24   :  { %629 = dma.done.wait [#allocation5], 2048  }
  0x25   :  { %630 = vsyncadd [#allocation5], 4294965248  ;;  %v635_v0 = vmov 0.0|0.0   ;;  %vm636_vm0 = vmmov 0   ;;  %v637_v1 = vmov 0.0   ;;  %v50_v2 = vld [vmem:[#allocation2] sm:$0xff] }
  0x26   :  { %552 = vmatprep.subr.bf16.mxu1 %v635_v0  ;;  %517 = vmatprep.mubr.msk.f32.mxu1 %vm636_vm0, %v637_v1  ;;  %v51_v3 = vld [vmem:[#allocation2 + $0x8] sm:$0xff]  ;;  %v52_v4 = vld [vmem:[#allocation2 + $0x10] sm:$0xff]  ;;  %v53_v6 = vld [vmem:[#allocation2 + $0x18] sm:$0xff] }
  0x27   :  { %v520_v5 = vpack.c.bf16 %v51_v3, %v50_v2  ;;  %461 = vmatprep.mubr.f32.mxu0 %v50_v2  ;;  %v524_v7 = vpack.c.bf16 %v53_v6, %v52_v4  ;;  %v54_v8 = vld [vmem:[#allocation2 + $0x20] sm:$0xff]  ;;  %v55_v9 = vld [vmem:[#allocation2 + $0x28] sm:$0xff]  ;;  %v56_v11 = vld [vmem:[#allocation2 + $0x30] sm:$0xff] }
  0x28   :  { %v528_v10 = vpack.c.bf16 %v55_v9, %v54_v8  ;;  %v57_v12 = vld [vmem:[#allocation2 + $0x38] sm:$0xff]  ;;  %v58_v14 = vld [vmem:[#allocation2 + $0x40] sm:$0xff]  ;;  %v59_v15 = vld [vmem:[#allocation2 + $0x48] sm:$0xff] }
  0x29   :  { %521 = vmatprep.subr.bf16.mxu0 %v520_v5  ;;  %554 = vmatpush3.bf16.xpose.msra.mxu1 %v520_v5  ;;  %v532_v13 = vpack.c.bf16 %v57_v12, %v56_v11  ;;  %v536_v16 = vpack.c.bf16 %v59_v15, %v58_v14  ;;  %v60_v17 = vld [vmem:[#allocation2 + $0x50] sm:$0xff]  ;;  %v61_v18 = vld [vmem:[#allocation2 + $0x58] sm:$0xff]  ;;  %v62_v20 = vld [vmem:[#allocation2 + $0x60] sm:$0xff] }
  0x2a   :  { %523 = vmatpush3.bf16.xpose.msra.mxu0 %v520_v5  ;;  %555 = vmatprep.subr.bf16.mxu1 %v635_v0  ;;  %v540_v19 = vpack.c.bf16 %v61_v18, %v60_v17  ;;  %v63_v21 = vld [vmem:[#allocation2 + $0x68] sm:$0xff]  ;;  %v64_v23 = vld [vmem:[#allocation2 + $0x70] sm:$0xff]  ;;  %v65_v24 = vld [vmem:[#allocation2 + $0x78] sm:$0xff] }
  0x2b   :  { %525 = vmatprep.subr.bf16.mxu0 %v524_v7  ;;  %v544_v22 = vpack.c.bf16 %v63_v21, %v62_v20  ;;  %v548_v25 = vpack.c.bf16 %v65_v24, %v64_v23  ;;  %v279_v26 = vld [vmem:[%s761_s4] sm:$0xff]  ;;  %v232_v32 = vld [vmem:[#allocation4 + $0x8] sm:$0xff]  ;;  %v234_v43 = vld [vmem:[#allocation4 + $0x18] sm:$0xff] }
  0x2c   :  { %v378_v27 = vld [vmem:[%s760_s3] ss:$0 sm:$0xff]  ;;  %v233_v46 = vld [vmem:[#allocation4 + $0x10] sm:$0xff]  ;;  %v236_v51 = vld [vmem:[#allocation4 + $0x28] sm:$0xff] }
  0x2d   :  { %v287_v28 = vsub.f32 %v279_v26, %v378_v27  ;;  %v379_v30 = vld [vmem:[%s759_s2] ss:$0 sm:$0xff]  ;;  %v238_v59 = vld [vmem:[#allocation4 + $0x38] sm:$0xff]  ;;  %v237_v62 = vld [vmem:[#allocation4 + $0x30] sm:$0xff] }
  0x2e   :  { %v231_v37 = vld [vmem:[#allocation4] sm:$0xff]  ;;  %v246_v27 = vld [vmem:[#allocation4 + $0x78] sm:$0xff] }
  0x2f   :  { %v235_v54 = vld [vmem:[#allocation4 + $0x20] sm:$0xff] }
  0x31   :  { %557 = vmatpush3.bf16.xpose.msra.mxu1 %v524_v7 }
  0x32   :  { %527 = vmatpush3.bf16.xpose.msra.mxu0 %v524_v7  ;;  %558 = vmatprep.subr.bf16.mxu1 %v635_v0 }
  0x33   :  { %529 = vmatprep.subr.bf16.mxu0 %v528_v10 }
  0x39   :  { %560 = vmatpush3.bf16.xpose.msra.mxu1 %v528_v10 }
  0x3a   :  { %531 = vmatpush3.bf16.xpose.msra.mxu0 %v528_v10  ;;  %561 = vmatprep.subr.bf16.mxu1 %v635_v0 }
  0x3b   :  { %533 = vmatprep.subr.bf16.mxu0 %v532_v13 }
  0x41   :  { %563 = vmatpush3.bf16.xpose.msra.mxu1 %v532_v13 }
  0x42   :  { %535 = vmatpush3.bf16.xpose.msra.mxu0 %v532_v13  ;;  %564 = vmatprep.subr.bf16.mxu1 %v635_v0 }
  0x43   :  { %537 = vmatprep.subr.bf16.mxu0 %v536_v16 }
  0x49   :  { %566 = vmatpush3.bf16.xpose.msra.mxu1 %v536_v16 }
  0x4a   :  { %539 = vmatpush3.bf16.xpose.msra.mxu0 %v536_v16  ;;  %567 = vmatprep.subr.bf16.mxu1 %v635_v0 }
  0x4b   :  { %541 = vmatprep.subr.bf16.mxu0 %v540_v19 }
  0x51   :  { %569 = vmatpush3.bf16.xpose.msra.mxu1 %v540_v19 }
  0x52   :  { %543 = vmatpush3.bf16.xpose.msra.mxu0 %v540_v19  ;;  %570 = vmatprep.subr.bf16.mxu1 %v635_v0  ;;  %v244_v19 = vld [vmem:[#allocation4 + $0x68] sm:$0xff] }
  0x53   :  { %545 = vmatprep.subr.bf16.mxu0 %v544_v22 }
  0x59   :  { %572 = vmatpush3.bf16.xpose.msra.mxu1 %v544_v22 }
  0x5a   :  { %547 = vmatpush3.bf16.xpose.msra.mxu0 %v544_v22  ;;  %573 = vmatprep.subr.bf16.mxu1 %v635_v0  ;;  %v243_v22 = vld [vmem:[#allocation4 + $0x60] sm:$0xff] }
  0x5b   :  { %549 = vmatprep.subr.bf16.mxu0 %v548_v25 }
  0x61   :  { %575 = vmatpush3.bf16.xpose.msra.mxu1 %v548_v25 }
  0x62   :  { %551 = vmatpush3.bf16.xpose.msra.mxu0 %v548_v25 }
  0x68   :  { %518 = vmatmul.mubr.f32.vlgmr.msra.gmra.mrb[0].mxu1 %v287_v28 }
  0x69   :  { %462 = vmatmul.mubr.f32.vlgmr.msra.gmra.mrb[0].mxu0 %v51_v3  ;;  %v240_v3 = vld [vmem:[#allocation4 + $0x48] sm:$0xff] }
  0x6a   :  { %464 = vmatprep.mubr.f32.mxu0 %v52_v4 }
  0x6d   :  { %465 = vmatmul.mubr.f32.gmra.mrb[2].mxu0 %v53_v6  ;;  %v239_v6 = vld [vmem:[#allocation4 + $0x40] sm:$0xff] }
  0x6e   :  { %467 = vmatprep.mubr.f32.mxu0 %v54_v8 }
  0x71   :  { %468 = vmatmul.mubr.f32.gmra.mrb[4].mxu0 %v55_v9 }
  0x72   :  { %470 = vmatprep.mubr.f32.mxu0 %v56_v11  ;;  %v242_v11 = vld [vmem:[#allocation4 + $0x58] sm:$0xff] }
  0x75   :  { %471 = vmatmul.mubr.f32.gmra.mrb[6].mxu0 %v57_v12 }
  0x76   :  { %473 = vmatprep.mubr.f32.mxu0 %v58_v14  ;;  %v241_v14 = vld [vmem:[#allocation4 + $0x50] sm:$0xff] }
  0x79   :  { %474 = vmatmul.mubr.f32.gmra.mrb[8].mxu0 %v59_v15 }
  0x7a   :  { %476 = vmatprep.mubr.f32.mxu0 %v60_v17 }
  0x7d   :  { %477 = vmatmul.mubr.f32.gmra.mrb[10].mxu0 %v61_v18 }
  0x7e   :  { %479 = vmatprep.mubr.f32.mxu0 %v62_v20 }
  0x81   :  { %480 = vmatmul.mubr.f32.gmra.mrb[12].mxu0 %v63_v21 }
  0x82   :  { %482 = vmatprep.mubr.f32.mxu0 %v64_v23 }
  0x85   :  { %483 = vmatmul.mubr.f32.gmra.mrb[14].mxu0 %v65_v24 }
 0x13b   :  { %v354_v29 = vpop.f32.mrb[0].mxu1 }
 0x13c   :  { %v463_v31 = vpop.f32.mrb[0].mxu0  ;;  %v358_v33 = vmul.f32 1000000.0, %v354_v29  ;;  %v519_v34 = vpop.f32.mrb[1].mxu1 }
 0x13d   :  { %v216_v35 = vmul.f32 1000000.0, %v463_v31  ;;  %v136_v36 = vpop.f32.mrb[1].mxu0 }
 0x13e   :  { %v215_v38 = vmul.f32 1000000.0, %v136_v36  ;;  %v366_v39 = vadd.f32 %v379_v30, %v358_v33  ;;  %v245_v30 = vld [vmem:[#allocation4 + $0x70] sm:$0xff] }
 0x13f   :  { %v248_v40 = vadd.f32 %v232_v32, %v216_v35 }
 0x140   :  { %v247_v41 = vadd.f32 %v231_v37, %v215_v38  ;;  %v466_v42 = vpop.f32.mrb[2].mxu0  ;;  %367 = vst [vmem:[%s763_s6] sm:$0xff] %v366_v39 }
 0x141   :  { %264 = vst [vmem:[%s762_s5 + $0x8] sm:$0xff] %v248_v40  ;;  %v218_v44 = vmul.f32 1000000.0, %v466_v42  ;;  %v146_v45 = vpop.f32.mrb[3].mxu0 }
 0x142   :  { %263 = vst [vmem:[%s762_s5] sm:$0xff] %v247_v41  ;;  %v217_v47 = vmul.f32 1000000.0, %v146_v45 }
 0x143   :  { %v250_v48 = vadd.f32 %v234_v43, %v218_v44 }
 0x144   :  { %v249_v49 = vadd.f32 %v233_v46, %v217_v47  ;;  %v469_v50 = vpop.f32.mrb[4].mxu0 }
 0x145   :  { %266 = vst [vmem:[%s762_s5 + $0x18] sm:$0xff] %v250_v48  ;;  %v220_v52 = vmul.f32 1000000.0, %v469_v50  ;;  %v156_v53 = vpop.f32.mrb[5].mxu0 }
 0x146   :  { %265 = vst [vmem:[%s762_s5 + $0x10] sm:$0xff] %v249_v49  ;;  %v219_v55 = vmul.f32 1000000.0, %v156_v53 }
 0x147   :  { %v252_v56 = vadd.f32 %v236_v51, %v220_v52 }
 0x148   :  { %v251_v57 = vadd.f32 %v235_v54, %v219_v55  ;;  %v472_v58 = vpop.f32.mrb[6].mxu0 }
 0x149   :  { %268 = vst [vmem:[%s762_s5 + $0x28] sm:$0xff] %v252_v56  ;;  %v222_v60 = vmul.f32 1000000.0, %v472_v58  ;;  %v166_v61 = vpop.f32.mrb[7].mxu0 }
 0x14a   :  { %267 = vst [vmem:[%s762_s5 + $0x20] sm:$0xff] %v251_v57  ;;  %v221_v63 = vmul.f32 1000000.0, %v166_v61 }
 0x14b   :  { %v254_v0 = vadd.f32 %v238_v59, %v222_v60 }
 0x14c   :  { %v253_v1 = vadd.f32 %v237_v62, %v221_v63  ;;  %v475_v2 = vpop.f32.mrb[8].mxu0 }
 0x14d   :  { %270 = vst [vmem:[%s762_s5 + $0x38] sm:$0xff] %v254_v0  ;;  %v224_v4 = vmul.f32 1000000.0, %v475_v2  ;;  %v176_v5 = vpop.f32.mrb[9].mxu0 }
 0x14e   :  { %269 = vst [vmem:[%s762_s5 + $0x30] sm:$0xff] %v253_v1  ;;  %v223_v7 = vmul.f32 1000000.0, %v176_v5 }
 0x14f   :  { %v256_v8 = vadd.f32 %v240_v3, %v224_v4 }
 0x150   :  { %v255_v9 = vadd.f32 %v239_v6, %v223_v7  ;;  %v478_v10 = vpop.f32.mrb[10].mxu0 }
 0x151   :  { %272 = vst [vmem:[%s762_s5 + $0x48] sm:$0xff] %v256_v8  ;;  %v226_v12 = vmul.f32 1000000.0, %v478_v10  ;;  %v186_v13 = vpop.f32.mrb[11].mxu0 }
 0x152   :  { %271 = vst [vmem:[%s762_s5 + $0x40] sm:$0xff] %v255_v9  ;;  %v225_v15 = vmul.f32 1000000.0, %v186_v13 }
 0x153   :  { %v258_v16 = vadd.f32 %v242_v11, %v226_v12 }
 0x154   :  { %v257_v17 = vadd.f32 %v241_v14, %v225_v15  ;;  %v481_v18 = vpop.f32.mrb[12].mxu0 }
 0x155   :  { %274 = vst [vmem:[%s762_s5 + $0x58] sm:$0xff] %v258_v16  ;;  %v228_v20 = vmul.f32 1000000.0, %v481_v18  ;;  %v196_v21 = vpop.f32.mrb[13].mxu0 }
 0x156   :  { %273 = vst [vmem:[%s762_s5 + $0x50] sm:$0xff] %v257_v17  ;;  %v227_v23 = vmul.f32 1000000.0, %v196_v21 }
 0x157   :  { %v260_v24 = vadd.f32 %v244_v19, %v228_v20 }
 0x158   :  { %v259_v25 = vadd.f32 %v243_v22, %v227_v23  ;;  %v484_v26 = vpop.f32.mrb[14].mxu0 }
 0x159   :  { %276 = vst [vmem:[%s762_s5 + $0x68] sm:$0xff] %v260_v24  ;;  %v230_v28 = vmul.f32 1000000.0, %v484_v26  ;;  %v206_v29 = vpop.f32.mrb[15].mxu0 }
 0x15a   :  { %275 = vst [vmem:[%s762_s5 + $0x60] sm:$0xff] %v259_v25  ;;  %v229_v31 = vmul.f32 1000000.0, %v206_v29 }
 0x15b   :  { %v262_v32 = vadd.f32 %v246_v27, %v230_v28 }
 0x15c   :  { %v261_v33 = vadd.f32 %v245_v30, %v229_v31 }
 0x15d   :  { %278 = vst [vmem:[%s762_s5 + $0x78] sm:$0xff] %v262_v32 }
 0x15e   :  { %277 = vst [vmem:[%s762_s5 + $0x70] sm:$0xff] %v261_v33 }
 0x15f   :  { %376 = vsyncpa [#allocation3], 1 }
 0x160   :  { %377 = vsyncpa [#allocation5], 1 }

</bundles_post_ra>
